<compile_context>
chip_gen: v7x
topology: tpu7x:2x2x1
jax: 0.10.0
libtpu: 0.0.40
codegen_flags: <defaults>
</compile_context>

<pallas_src>
import math
import functools

import numpy as np
import jax
import jax.numpy as jnp
from jax.experimental import pallas as pl
from jax.experimental.pallas import tpu as pltpu


def _spp_kernel(x_ref, wkq_ref, bkq_ref, *rest, doc_l, doc_lp, tb, hp,
                num_levels, total, total_pad, is_softmax, pool_type,
                approx_softmax):
    if pool_type == 'avg_pool':
        pmat_ref, o_ref, kq_ref = rest
    else:
        o_ref, kq_ref = rest

    f32 = jnp.float32
    L, Lp, Hp = doc_l, doc_lp, hp
    out_sizes = [2 ** i for i in range(num_levels)]
    finest = out_sizes[-1]
    lane_pad = total_pad - total

    w = wkq_ref[...]                         # (Hp, 2*Hp)  [Wk | Wq*scale], mm dtype
    b = bkq_ref[...].astype(f32)             # (1, 2*Hp)   [bk | bq*scale]

    # Fused K/Q projection for the whole batch tile, staged through VMEM scratch so
    # the (tb*Lp, 2*Hp) intermediate does not stay live (in vregs) across the loop.
    kq_ref[...] = (jnp.dot(x_ref[...], w, preferred_element_type=f32)
                   + b).astype(kq_ref.dtype)

    if pool_type == 'avg_pool':
        pmat = pmat_ref[...]                 # (L, total_pad) pooling matrix (hoisted)

    # Hoisted zero pads (JAX does not CSE broadcast_in_dim inside loops).
    zlane = (jnp.zeros((L, lane_pad), f32)
             if (pool_type != 'avg_pool' and lane_pad) else None)
    zrows = jnp.zeros((Lp - L, total_pad), f32) if Lp > L else None

    def _max_pool_cols(feats):
        if L % finest == 0:
            # Hierarchical SPP: one segmented reduce for the finest level, then
            # pairwise combines -> ~num_levels XLU reduces instead of 15 slices.
            levels = [jnp.max(feats.reshape(L, finest, L // finest), axis=-1)]
            while levels[-1].shape[-1] > 1:
                cur = levels[-1]
                n = cur.shape[-1]
                levels.append(jnp.max(cur.reshape(L, n // 2, 2), axis=-1))
            return levels[::-1]                          # widths 1, 2, ..., finest
        # Exact AdaptiveMaxPool1d bins for L not divisible by 2**(num_levels-1).
        cols = []
        for o in out_sizes:
            for j in range(o):
                start = (j * L) // o
                end = -(-((j + 1) * L) // o)
                cols.append(jnp.max(feats[:, start:end], axis=-1, keepdims=True))
        return cols

    # Static unroll over the batch tile; wrapper caps tb (<=32) so code size and
    # live ranges stay bounded.  (For much larger tb this would become a
    # lax.fori_loop over a pl.ds(pl.multiple_of(i*Lp, 8), Lp) slice of kq_ref.)
    for i in range(tb):
        kq = kq_ref[i * Lp:i * Lp + L, :]                # 8-aligned static slice
        key, query = kq[:, :Hp], kq[:, Hp:]

        # scores = (Q / sqrt(d_k)) @ K^T ; the scale is pre-folded into Wq/bq,
        # and contracting the last dims avoids any XLU transpose of K.
        s = jax.lax.dot_general(query, key, (((1,), (1,)), ((), ())),
                                preferred_element_type=f32)
        if is_softmax:
            m = jnp.max(s, axis=-1, keepdims=True)
            e = jnp.exp(s - m)
            den = jnp.sum(e, axis=-1, keepdims=True)
            if approx_softmax:
                s = e * pl.reciprocal(den, approx=True)  # EUP slot (~1e-3 rel err)
            else:
                s = e / den                              # exact (torch parity)
        s = jnp.tanh(s)

        if pool_type == 'avg_pool':
            # All adaptive-avg bins as one MXU matmul -> lane-dense (L, 128) slab.
            pooled = jnp.dot(s.astype(w.dtype), pmat, preferred_element_type=f32)
        else:
            cols = _max_pool_cols(s)
            if zlane is not None:
                cols = cols + [zlane]
            pooled = jnp.concatenate(cols, axis=-1)

        if zrows is not None:                            # pad L -> Lp rows (sliced off)
            pooled = jnp.concatenate([pooled, zrows], axis=0)
        o_ref[i] = pooled.astype(o_ref.dtype)


def inter_sentence_spp(sentpres, wk, bk, wq, bq, *, num_levels=4,
                       pool_type='max_pool', is_softmax=False,
                       matmul_dtype=jnp.bfloat16, batch_tile=None,
                       approx_softmax=False):
    """Pallas forward of InterSentenceSPPLayer.

    wk/wq are stored pre-transposed as (H_in, H_out) so y = x @ W + b == nn.Linear.
    matmul_dtype controls MXU input dtype (bf16 default, f32 accumulation);
    use jnp.float32 for bit-level parity with the f32 PyTorch layer.
    approx_softmax=True uses the EUP approximate reciprocal for the softmax denom.
    """
    B, L, H = sentpres.shape
    f32 = jnp.float32
    mm_dtype = jnp.dtype(matmul_dtype)
    mm_bytes = mm_dtype.itemsize
    out_dtype = sentpres.dtype
    out_bytes = jnp.dtype(out_dtype).itemsize

    out_sizes = [2 ** i for i in range(num_levels)]
    total = sum(out_sizes)
    total_pad = -(-total // 128) * 128       # lane-dense (unmasked) output stores

    # Fold 1/sqrt(d_k) into the Q projection (one-time O(H^2) wrapper cost,
    # removes a B*L*L VPU multiply from the kernel).
    scale = 1.0 / math.sqrt(H)
    wk = wk.astype(f32)
    bk = bk.astype(f32)
    wq = wq.astype(f32) * scale
    bq = bq.astype(f32) * scale

    # Pad hidden dim to a multiple of 128 lanes (zero pad -> numerically exact).
    Hp = -(-H // 128) * 128
    dh = Hp - H
    x = sentpres.astype(f32)
    if dh:
        x = jnp.pad(x, ((0, 0), (0, 0), (0, dh)))
        wk = jnp.pad(wk, ((0, dh), (0, dh)))
        wq = jnp.pad(wq, ((0, dh), (0, dh)))
        bk = jnp.pad(bk, ((0, dh),))
        bq = jnp.pad(bq, ((0, dh),))

    # Fuse the K / Q projections into a single (Hp, 2*Hp) matmul.
    wkq = jnp.concatenate([wk, wq], axis=1).astype(mm_dtype)
    bkq = jnp.concatenate([bk, bq]).reshape(1, 2 * Hp).astype(f32)

    # Pad doc length to a sublane multiple: fused (tb*Lp, Hp) projection with no
    # in-kernel reshape, every per-example slice 8-aligned.  Padded rows never
    # enter the (L, L) score matrix, so semantics are unchanged.
    Lp = -(-L // 8) * 8
    if Lp != L:
        x = jnp.pad(x, ((0, 0), (0, Lp - L), (0, 0)))
    x = x.astype(mm_dtype)                   # bf16 activations halve input DMA bytes

    # avg-pool: all bins as one MXU matmul against a constant pooling matrix.
    pmat = None
    if pool_type == 'avg_pool':
        p = np.zeros((L, total_pad), np.float32)
        col = 0
        for o in out_sizes:
            for j in range(o):
                start = (j * L) // o
                end = -(-((j + 1) * L) // o)
                p[start:end, col] = 1.0 / (end - start)
                col += 1
        pmat = jnp.asarray(p, dtype=mm_dtype)

    # --- batch tile: ~512 fused LHS rows/step, grid >= 2, v7x VMEM budget ---
    def _vmem_bytes(tb_):
        bts = 2 * tb_ * Lp * Hp * mm_bytes                    # x block (double-buffered)
        bts += Hp * 2 * Hp * mm_bytes + 2 * Hp * 4            # wkq + bkq (single-buffered)
        if pmat is not None:
            bts += L * total_pad * mm_bytes                   # pooling matrix
        bts += 2 * tb_ * Lp * total_pad * out_bytes           # out block (double-buffered)
        bts += tb_ * Lp * 2 * Hp * mm_bytes                   # kq VMEM scratch
        bts += 4 * (L * L + L * total_pad + tb_ * Lp * Hp) * 4  # live intermediates headroom
        return bts

    if batch_tile is not None:
        tb = max(1, min(B, int(batch_tile)))
    else:
        tb = max(1, min(B, -(-512 // Lp), 32))                # ~512 fused rows, bounded unroll
        if B >= 2:
            tb = min(tb, max(1, B // 2))                      # grid >= 2: v7x 2 TCs + prefetch overlap
            cap4 = max(1, B // 4)
            if B >= 4 and cap4 * Lp >= 256:
                tb = min(tb, cap4)                            # grid >= 4 when the MXU stays fed
        while tb > 1 and _vmem_bytes(tb) > 48 * 2 ** 20:      # v7x: 64 MiB physical VMEM
            tb -= 1

    Bp = -(-B // tb) * tb
    if Bp != B:
        # Padded batch rows run bias-only compute (finite) and are sliced off
        # below -- wasted work only, NOT a correctness issue; do not remove slice.
        x = jnp.pad(x, ((0, Bp - B), (0, 0), (0, 0)))

    x_in = x.reshape(Bp * Lp, Hp)
    grid = (Bp // tb,)

    kernel = functools.partial(
        _spp_kernel, doc_l=L, doc_lp=Lp, tb=tb, hp=Hp, num_levels=num_levels,
        total=total, total_pad=total_pad, is_softmax=is_softmax,
        pool_type=pool_type, approx_softmax=approx_softmax)

    flops = 2 * Bp * Lp * Hp * 2 * Hp + 2 * Bp * L * L * Hp
    if pmat is not None:
        flops += 2 * Bp * L * L * total_pad
    transcendentals = Bp * L * L * (3 if is_softmax else 1)
    bytes_accessed = (x_in.size * mm_bytes + wkq.size * mm_bytes + bkq.size * 4
                      + (pmat.size * mm_bytes if pmat is not None else 0)
                      + Bp * Lp * total_pad * out_bytes)
    cost = pl.CostEstimate(flops=int(flops), transcendentals=int(transcendentals),
                           bytes_accessed=int(bytes_accessed))

    def _invariant_spec(block_shape, single_buffer):
        # Grid-invariant block -> single-buffer it (saves a full weight copy of VMEM).
        index_map = lambda *_: (0,) * len(block_shape)
        if single_buffer and hasattr(pl, "Buffered"):
            try:
                return pl.BlockSpec(block_shape, index_map,
                                    pipeline_mode=pl.Buffered(1))
            except TypeError:       # pipeline_mode kwarg unavailable on this jax
                pass
        return pl.BlockSpec(block_shape, index_map)

    def _run(single_buffer):
        in_specs = [pl.BlockSpec((tb * Lp, Hp), lambda g: (g, 0)),
                    _invariant_spec((Hp, 2 * Hp), single_buffer),
                    _invariant_spec((1, 2 * Hp), single_buffer)]
        operands = [x_in, wkq, bkq]
        if pmat is not None:
            in_specs.append(_invariant_spec((L, total_pad), single_buffer))
            operands.append(pmat)
        return pl.pallas_call(
            kernel,
            out_shape=jax.ShapeDtypeStruct((Bp, Lp, total_pad), out_dtype),
            grid_spec=pltpu.PrefetchScalarGridSpec(
                num_scalar_prefetch=0,
                grid=grid,
                in_specs=in_specs,
                out_specs=pl.BlockSpec((tb, Lp, total_pad), lambda g: (g, 0, 0)),
                scratch_shapes=[pltpu.VMEM((tb * Lp, 2 * Hp), mm_dtype)],
            ),
            compiler_params=pltpu.CompilerParams(
                dimension_semantics=("parallel",),
                vmem_limit_bytes=int(min(64 * 2 ** 20,
                                         max(2 * _vmem_bytes(tb), 32 * 2 ** 20))),
            ),
            cost_estimate=cost,
        )(*operands)

    try:
        out = _run(single_buffer=True)
    except Exception:   # single-buffered pipeline_mode unsupported -> default buffering
        out = _run(single_buffer=False)

    return out[:B, :L, :total]


def _reference(sentpres, wk, bk, wq, bq, *, num_levels=4,
               pool_type='max_pool', is_softmax=False):
    """Pure-JAX reference mirroring the PyTorch forward."""
    B, L, H = sentpres.shape
    key = sentpres @ wk + bk
    query = sentpres @ wq + bq
    feats = jnp.einsum('bld,bkd->blk', query, key) / math.sqrt(H)
    if is_softmax:
        feats = jax.nn.softmax(feats, axis=2)
    feats = jnp.tanh(feats)
    pooled = []
    for i in range(num_levels):
        o = 2 ** i
        for j in range(o):
            start = (j * L) // o
            end = ((j + 1) * L + o - 1) // o
            seg = feats[:, :, start:end]
            if pool_type == 'max_pool':
                pooled.append(jnp.max(seg, axis=-1, keepdims=True))
            else:
                pooled.append(jnp.mean(seg, axis=-1, keepdims=True))
    return jnp.concatenate(pooled, axis=-1)


if __name__ == "__main__":
    root = jax.random.PRNGKey(0)
    kx, kwk, kbk, kwq, kbq, kx2, kwk2, kbk2, kwq2, kbq2 = jax.random.split(root, 10)

    # ---- case 1: B=2, L=8, H=32, max_pool, exact f32 MXU path ----
    B, L, H = 2, 8, 32
    bound = 1.0 / math.sqrt(H)
    x = jax.random.normal(kx, (B, L, H), dtype=jnp.float32)
    wk = jax.random.uniform(kwk, (H, H), jnp.float32, -bound, bound)   # already (in, out)
    bk = jax.random.uniform(kbk, (H,), jnp.float32, -bound, bound)
    wq = jax.random.uniform(kwq, (H, H), jnp.float32, -bound, bound)
    bq = jax.random.uniform(kbq, (H,), jnp.float32, -bound, bound)

    ref1 = _reference(x, wk, bk, wq, bq)
    out1 = jax.block_until_ready(
        inter_sentence_spp(x, wk, bk, wq, bq, matmul_dtype=jnp.float32))
    assert out1.shape == (B, L, 15), out1.shape
    assert jnp.allclose(out1, ref1, atol=1e-5, rtol=1e-5), "case 1 mismatch"

    # ---- case 2: softmax + avg_pool (matmul pooling), f32 path ----
    ref2 = _reference(x, wk, bk, wq, bq, pool_type='avg_pool', is_softmax=True)
    out2 = jax.block_until_ready(inter_sentence_spp(
        x, wk, bk, wq, bq, pool_type='avg_pool', is_softmax=True,
        matmul_dtype=jnp.float32))
    assert jnp.allclose(out2, ref2, atol=1e-4, rtol=1e-4), "case 2 mismatch"

    # ---- case 3: non-aligned L (max fallback bins), batch padding, grid > 1 ----
    B3, L3, H3 = 3, 10, 40
    bound3 = 1.0 / math.sqrt(H3)
    x3 = jax.random.normal(kx2, (B3, L3, H3), dtype=jnp.float32)
    wk3 = jax.random.uniform(kwk2, (H3, H3), jnp.float32, -bound3, bound3)
    bk3 = jax.random.uniform(kbk2, (H3,), jnp.float32, -bound3, bound3)
    wq3 = jax.random.uniform(kwq2, (H3, H3), jnp.float32, -bound3, bound3)
    bq3 = jax.random.uniform(kbq2, (H3,), jnp.float32, -bound3, bound3)
    ref3 = _reference(x3, wk3, bk3, wq3, bq3)
    out3 = jax.block_until_ready(inter_sentence_spp(
        x3, wk3, bk3, wq3, bq3, matmul_dtype=jnp.float32, batch_tile=2))
    assert out3.shape == (B3, L3, 15), out3.shape
    assert jnp.allclose(out3, ref3, atol=1e-5, rtol=1e-5), "case 3 mismatch"

    # ---- case 4: non-aligned L, avg_pool matmul pooling with uneven bins ----
    ref4 = _reference(x3, wk3, bk3, wq3, bq3, pool_type='avg_pool', is_softmax=True)
    out4 = jax.block_until_ready(inter_sentence_spp(
        x3, wk3, bk3, wq3, bq3, pool_type='avg_pool', is_softmax=True,
        matmul_dtype=jnp.float32))
    assert jnp.allclose(out4, ref4, atol=1e-4, rtol=1e-4), "case 4 mismatch"

    # ---- case 5: default bf16 MXU path (loose tolerance vs f32 reference) ----
    out5 = jax.block_until_ready(inter_sentence_spp(x, wk, bk, wq, bq))
    assert jnp.allclose(out5, ref1, atol=1e-1, rtol=1e-1), "case 5 mismatch"

    # ---- case 6: EUP approx-reciprocal softmax option ----
    out6 = jax.block_until_ready(inter_sentence_spp(
        x, wk, bk, wq, bq, pool_type='avg_pool', is_softmax=True,
        matmul_dtype=jnp.float32, approx_softmax=True))
    assert jnp.allclose(out6, ref2, atol=2e-3, rtol=2e-3), "case 6 mismatch"

    print("KERNEL_OK")
</pallas_src>

<mosaic_0001>
module attributes {stable_mosaic.version = 11 : i64} {
  func.func @_spp_kernel(%arg0: i32, %arg1: memref<8x128xf32, #tpu.memory_space<vmem>>, %arg2: memref<128x256xf32, #tpu.memory_space<vmem>>, %arg3: memref<1x256xf32, #tpu.memory_space<vmem>>, %arg4: memref<1x8x128xf32, #tpu.memory_space<vmem>>, %arg5: memref<8x256xf32, #tpu.memory_space<vmem>>) attributes {dimension_semantics = [#tpu.dimension_semantics<parallel>], iteration_bounds = array<i64: 2>, scalar_prefetch = 0 : i64, scratch_operands = 1 : i64, tpu.core_type = #tpu.core_type<tc>, window_params = [{transform_indices = @transform_0, window_bounds = array<i64: 8, 128>}, {pipeline_mode = #tpu.pipeline_mode<synchronous>, transform_indices = @transform_1, window_bounds = array<i64: 128, 256>}, {pipeline_mode = #tpu.pipeline_mode<synchronous>, transform_indices = @transform_2, window_bounds = array<i64: 1, 256>}, {transform_indices = @transform_3, window_bounds = array<i64: 1, 8, 128>}]} {
    %c0 = arith.constant 0 : index
    %c0_0 = arith.constant 0 : index
    %0 = vector.load %arg2[%c0, %c0_0] : memref<128x256xf32, #tpu.memory_space<vmem>>, vector<128x256xf32>
    %c0_1 = arith.constant 0 : index
    %c0_2 = arith.constant 0 : index
    %1 = vector.load %arg3[%c0_1, %c0_2] : memref<1x256xf32, #tpu.memory_space<vmem>>, vector<1x256xf32>
    %c0_3 = arith.constant 0 : index
    %c0_4 = arith.constant 0 : index
    %2 = vector.load %arg1[%c0_3, %c0_4] : memref<8x128xf32, #tpu.memory_space<vmem>>, vector<8x128xf32>
    %cst = arith.constant dense<0.000000e+00> : vector<8x256xf32>
    %3 = tpu.matmul %2, %0, %cst {dimension_numbers = #tpu.dot_dimension_numbers<[1], [0], [0], [1], [0, 0, 1, 1], [], []>} : vector<8x128xf32>, vector<128x256xf32>, vector<8x256xf32> -> vector<8x256xf32>
    %4 = vector.broadcast %1 : vector<1x256xf32> to vector<8x256xf32>
    %5 = arith.addf %3, %4 : vector<8x256xf32>
    %c0_5 = arith.constant 0 : index
    %c0_6 = arith.constant 0 : index
    %6 = vector.load %arg5[%c0_5, %c0_6] : memref<8x256xf32, #tpu.memory_space<vmem>>, vector<8x256xf32>
    tpu.vector_store %arg5[%c0_5, %c0_6], %5 {strides = array<i32>} : memref<8x256xf32, #tpu.memory_space<vmem>>, vector<8x256xf32>,
    %cst_7 = arith.constant 0.000000e+00 : f32
    %7 = vector.broadcast %cst_7 : f32 to vector<8x113xf32>
    %c0_8 = arith.constant 0 : index
    %c0_9 = arith.constant 0 : index
    %8 = vector.load %arg5[%c0_8, %c0_9] : memref<8x256xf32, #tpu.memory_space<vmem>>, vector<8x256xf32>
    %9 = vector.extract_strided_slice %8 {offsets = [0, 0], sizes = [8, 128], strides = [1, 1]} : vector<8x256xf32> to vector<8x128xf32>
    %10 = vector.extract_strided_slice %8 {offsets = [0, 128], sizes = [8, 128], strides = [1, 1]} : vector<8x256xf32> to vector<8x128xf32>
    %cst_10 = arith.constant dense<0.000000e+00> : vector<8x8xf32>
    %11 = tpu.matmul %10, %9, %cst_10 {dimension_numbers = #tpu.dot_dimension_numbers<[1], [1], [0], [0], [0, 0, 1, 0], [], []>} : vector<8x128xf32>, vector<8x128xf32>, vector<8x8xf32> -> vector<8x8xf32>
    %12 = math.tanh %11 : vector<8x8xf32>
    %13 = vector.shape_cast %12 : vector<8x8xf32> to vector<8x8x1xf32>
    %cst_11 = arith.constant dense<0xFF800000> : vector<8x8xf32>
    %14 = vector.multi_reduction <maximumf>, %13, %cst_11 [2] : vector<8x8x1xf32> to vector<8x8xf32>
    %15 = vector.shape_cast %14 : vector<8x8xf32> to vector<8x4x2xf32>
    %cst_12 = arith.constant dense<0xFF800000> : vector<8x4xf32>
    %16 = vector.multi_reduction <maximumf>, %15, %cst_12 [2] : vector<8x4x2xf32> to vector<8x4xf32>
    %17 = vector.shape_cast %16 : vector<8x4xf32> to vector<8x2x2xf32>
    %cst_13 = arith.constant dense<0xFF800000> : vector<8x2xf32>
    %18 = vector.multi_reduction <maximumf>, %17, %cst_13 [2] : vector<8x2x2xf32> to vector<8x2xf32>
    %19 = vector.shape_cast %18 : vector<8x2xf32> to vector<8x1x2xf32>
    %cst_14 = arith.constant dense<0xFF800000> : vector<8x1xf32>
    %20 = vector.multi_reduction <maximumf>, %19, %cst_14 [2] : vector<8x1x2xf32> to vector<8x1xf32>
    %21 = tpu.concatenate %20, %18, %16, %14, %7 in 1 : vector<8x1xf32>, vector<8x2xf32>, vector<8x4xf32>, vector<8x8xf32>, vector<8x113xf32> -> vector<8x128xf32>
    %c0_15 = arith.constant 0 : index
    %c0_16 = arith.constant 0 : index
    %c0_17 = arith.constant 0 : index
    %22 = vector.load %arg4[%c0_15, %c0_16, %c0_17] : memref<1x8x128xf32, #tpu.memory_space<vmem>>, vector<1x8x128xf32>
    %23 = vector.shape_cast %22 : vector<1x8x128xf32> to vector<8x128xf32>
    %24 = vector.shape_cast %21 : vector<8x128xf32> to vector<1x8x128xf32>
    tpu.vector_store %arg4[%c0_15, %c0_16, %c0_17], %24 {strides = array<i32>} : memref<1x8x128xf32, #tpu.memory_space<vmem>>, vector<1x8x128xf32>,
    return
  }
  func.func @transform_0(%arg0: i32) -> (i32, i32) {
    %c0_i32 = arith.constant 0 : i32
    %c0_i32_0 = arith.constant 0 : i32
    return %arg0, %c0_i32 : i32, i32
  }
  func.func @transform_1(%arg0: i32) -> (i32, i32) {
    %c0_i32 = arith.constant 0 : i32
    %c0_i32_0 = arith.constant 0 : i32
    %c0_i32_1 = arith.constant 0 : i32
    return %c0_i32, %c0_i32_0 : i32, i32
  }
  func.func @transform_2(%arg0: i32) -> (i32, i32) {
    %c0_i32 = arith.constant 0 : i32
    %c0_i32_0 = arith.constant 0 : i32
    %c0_i32_1 = arith.constant 0 : i32
    return %c0_i32, %c0_i32_0 : i32, i32
  }
  func.func @transform_3(%arg0: i32) -> (i32, i32, i32) {
    %c0_i32 = arith.constant 0 : i32
    %c0_i32_0 = arith.constant 0 : i32
    %c0_i32_1 = arith.constant 0 : i32
    return %arg0, %c0_i32, %c0_i32_0 : i32, i32, i32
  }
}

module attributes {stable_mosaic.version = 11 : i64} {
  func.func @_spp_kernel(%arg0: i32, %arg1: memref<8x128xf32, #tpu.memory_space<vmem>>, %arg2: memref<128x256xf32, #tpu.memory_space<vmem>>, %arg3: memref<1x256xf32, #tpu.memory_space<vmem>>, %arg4: memref<1x8x128xf32, #tpu.memory_space<vmem>>, %arg5: memref<8x256xf32, #tpu.memory_space<vmem>>) attributes {dimension_semantics = [#tpu.dimension_semantics<parallel>], iteration_bounds = array<i64: 2>, scalar_prefetch = 0 : i64, scratch_operands = 1 : i64, tpu.core_type = #tpu.core_type<tc>, window_params = [{transform_indices = @transform_0, window_bounds = array<i64: 8, 128>}, {pipeline_mode = #tpu.pipeline_mode<synchronous>, transform_indices = @transform_1, window_bounds = array<i64: 128, 256>}, {pipeline_mode = #tpu.pipeline_mode<synchronous>, transform_indices = @transform_2, window_bounds = array<i64: 1, 256>}, {transform_indices = @transform_3, window_bounds = array<i64: 1, 8, 128>}]} {
    %c0 = arith.constant 0 : index
    %c0_0 = arith.constant 0 : index
    %0 = vector.load %arg2[%c0, %c0_0] : memref<128x256xf32, #tpu.memory_space<vmem>>, vector<128x256xf32>
    %c0_1 = arith.constant 0 : index
    %c0_2 = arith.constant 0 : index
    %1 = vector.load %arg3[%c0_1, %c0_2] : memref<1x256xf32, #tpu.memory_space<vmem>>, vector<1x256xf32>
    %c0_3 = arith.constant 0 : index
    %c0_4 = arith.constant 0 : index
    %2 = vector.load %arg1[%c0_3, %c0_4] : memref<8x128xf32, #tpu.memory_space<vmem>>, vector<8x128xf32>
    %cst = arith.constant dense<0.000000e+00> : vector<8x256xf32>
    %3 = tpu.matmul %2, %0, %cst {dimension_numbers = #tpu.dot_dimension_numbers<[1], [0], [0], [1], [0, 0, 1, 1], [], []>} : vector<8x128xf32>, vector<128x256xf32>, vector<8x256xf32> -> vector<8x256xf32>
    %4 = vector.broadcast %1 : vector<1x256xf32> to vector<8x256xf32>
    %5 = arith.addf %3, %4 : vector<8x256xf32>
    %c0_5 = arith.constant 0 : index
    %c0_6 = arith.constant 0 : index
    %6 = vector.load %arg5[%c0_5, %c0_6] : memref<8x256xf32, #tpu.memory_space<vmem>>, vector<8x256xf32>
    tpu.vector_store %arg5[%c0_5, %c0_6], %5 {strides = array<i32>} : memref<8x256xf32, #tpu.memory_space<vmem>>, vector<8x256xf32>,
    %cst_7 = arith.constant 0.000000e+00 : f32
    %7 = vector.broadcast %cst_7 : f32 to vector<8x113xf32>
    %c0_8 = arith.constant 0 : index
    %c0_9 = arith.constant 0 : index
    %8 = vector.load %arg5[%c0_8, %c0_9] : memref<8x256xf32, #tpu.memory_space<vmem>>, vector<8x256xf32>
    %9 = vector.extract_strided_slice %8 {offsets = [0, 0], sizes = [8, 128], strides = [1, 1]} : vector<8x256xf32> to vector<8x128xf32>
    %10 = vector.extract_strided_slice %8 {offsets = [0, 128], sizes = [8, 128], strides = [1, 1]} : vector<8x256xf32> to vector<8x128xf32>
    %cst_10 = arith.constant dense<0.000000e+00> : vector<8x8xf32>
    %11 = tpu.matmul %10, %9, %cst_10 {dimension_numbers = #tpu.dot_dimension_numbers<[1], [1], [0], [0], [0, 0, 1, 0], [], []>} : vector<8x128xf32>, vector<8x128xf32>, vector<8x8xf32> -> vector<8x8xf32>
    %12 = math.tanh %11 : vector<8x8xf32>
    %13 = vector.shape_cast %12 : vector<8x8xf32> to vector<8x8x1xf32>
    %cst_11 = arith.constant dense<0xFF800000> : vector<8x8xf32>
    %14 = vector.multi_reduction <maximumf>, %13, %cst_11 [2] : vector<8x8x1xf32> to vector<8x8xf32>
    %15 = vector.shape_cast %14 : vector<8x8xf32> to vector<8x4x2xf32>
    %cst_12 = arith.constant dense<0xFF800000> : vector<8x4xf32>
    %16 = vector.multi_reduction <maximumf>, %15, %cst_12 [2] : vector<8x4x2xf32> to vector<8x4xf32>
    %17 = vector.shape_cast %16 : vector<8x4xf32> to vector<8x2x2xf32>
    %cst_13 = arith.constant dense<0xFF800000> : vector<8x2xf32>
    %18 = vector.multi_reduction <maximumf>, %17, %cst_13 [2] : vector<8x2x2xf32> to vector<8x2xf32>
    %19 = vector.shape_cast %18 : vector<8x2xf32> to vector<8x1x2xf32>
    %cst_14 = arith.constant dense<0xFF800000> : vector<8x1xf32>
    %20 = vector.multi_reduction <maximumf>, %19, %cst_14 [2] : vector<8x1x2xf32> to vector<8x1xf32>
    %21 = tpu.concatenate %20, %18, %16, %14, %7 in 1 : vector<8x1xf32>, vector<8x2xf32>, vector<8x4xf32>, vector<8x8xf32>, vector<8x113xf32> -> vector<8x128xf32>
    %c0_15 = arith.constant 0 : index
    %c0_16 = arith.constant 0 : index
    %c0_17 = arith.constant 0 : index
    %22 = vector.load %arg4[%c0_15, %c0_16, %c0_17] : memref<1x8x128xf32, #tpu.memory_space<vmem>>, vector<1x8x128xf32>
    %23 = vector.shape_cast %22 : vector<1x8x128xf32> to vector<8x128xf32>
    %24 = vector.shape_cast %21 : vector<8x128xf32> to vector<1x8x128xf32>
    tpu.vector_store %arg4[%c0_15, %c0_16, %c0_17], %24 {strides = array<i32>} : memref<1x8x128xf32, #tpu.memory_space<vmem>>, vector<1x8x128xf32>,
    return
  }
  func.func @transform_0(%arg0: i32) -> (i32, i32) {
    %c0_i32 = arith.constant 0 : i32
    %c0_i32_0 = arith.constant 0 : i32
    return %arg0, %c0_i32 : i32, i32
  }
  func.func @transform_1(%arg0: i32) -> (i32, i32) {
    %c0_i32 = arith.constant 0 : i32
    %c0_i32_0 = arith.constant 0 : i32
    %c0_i32_1 = arith.constant 0 : i32
    return %c0_i32, %c0_i32_0 : i32, i32
  }
  func.func @transform_2(%arg0: i32) -> (i32, i32) {
    %c0_i32 = arith.constant 0 : i32
    %c0_i32_0 = arith.constant 0 : i32
    %c0_i32_1 = arith.constant 0 : i32
    return %c0_i32, %c0_i32_0 : i32, i32
  }
  func.func @transform_3(%arg0: i32) -> (i32, i32, i32) {
    %c0_i32 = arith.constant 0 : i32
    %c0_i32_0 = arith.constant 0 : i32
    %c0_i32_1 = arith.constant 0 : i32
    return %arg0, %c0_i32, %c0_i32_0 : i32, i32, i32
  }
}

</mosaic_0001>

<bundles_post_ra>
// kernel: tpu_custom_call.1
= control target key start
LH: loop header
LB: loop body
LE: loop exit
PB: predicated region body
PF: predicated region fallthrough
CT: control target
= control target key end

     0   :  { %8 = vsyncpa [#allocation4], 0  ;;  %s1652_s0 = inlined_call_operand.hbm [shape: f32[16,128], index: 0, kind: input, shape index: {}]   ;;  %s1653_s1 = inlined_call_operand.hbm [shape: f32[128,256], index: 1, kind: input, shape index: {}]   ;;  %s1654_s2 = inlined_call_operand.vmem [shape: f32[1,256], index: 2, kind: input, shape index: {}]   ;;  %s1655_s3 = inlined_call_operand.hbm [shape: f32[2,8,128], index: 3, kind: output, shape index: {}]  }
   0x1   :  { %10 = vsyncpa [#allocation4 + $0x1], 0 }
   0x2   :  { %11 = vsyncpa [#allocation7], 0 }
   0x3   :  { %12 = vsyncpa [#allocation5], 0 }
   0x4   :  { %14 = vsyncpa [#allocation5 + $0x1], 0  ;;  %s1297_s12 = smov 0   ;;  %s1299_s13 = smov 0  }
   0x5   :  { %s1301_s14 = smov 0   ;;  %s1303_s15 = smov 0  }
   0x6 LB: > { %s1318_s16 = sadd.s32 4294967295, %s1261_s15   ;;  %s1008_s17 = sadd.s32 4294967294, %s1261_s15   ;;  %s1261_s15 = sphi %s1303_s15, %s1675_s15   ;;  %s1257_s14 = sphi %s1301_s14, %s1674_s14   ;;  %s1253_s13 = sphi %s1299_s13, %s1673_s13   ;;  %s1249_s12 = sphi %s1297_s12, %s1672_s12  }
   0x7   : > { %p40_p0 = scmp.ne.s32.totalorder %s1253_s13, %s1249_s12  ;;  %p1656_p1 = scmp.eq.s32.totalorder %s1318_s16, 0 }
   0x8   : > { %p112_p3 = scmp.eq.s32.totalorder %s1008_s17, 1  ;;  %p1009_p5 = scmp.ge.s32.totalorder %s1261_s15, 1 }
   0x9   : > { %p1327_p4 = por %p1656_p1, %p40_p0  ;;  %p119_p7 = scmp.lt.s32.totalorder %s1261_s15, 3 }
   0xa   : > { %p1332_p6 = por %p112_p3, %p40_p0  ;;  %s1263_s21 = smov [#allocation6]  }
   0xb   : > { %s1659_s18 = scalar_select %p1327_p4, 1, 0 }
   0xc   : > { %s1660_s19 = scalar_select %p1332_p6, 1, 0 }
   0xd   : > { %p1337_p8 = pnand %p1009_p5, %p119_p7  ;;  %s131_s22 = sshll.u32 %s1263_s21, 4  ;;  %s1341_s22 = int_to_ptr.vmem [resolvable:$true] %s131_s22 }
   0xe   : > { %s1353_s24 = sadd.s32 1, %s1261_s15   ;;  %s27_s25 = sadd.s32 1, %s1257_s14 }
   0xf   : > { %s1661_s20 = scalar_select %p1337_p8, 1, 0 }
  0x10   : > { %p1069_p9 = pneg %p1337_p8  ;;  %s24_s26 = ssub.s32 %s1261_s15, %s1353_s24 }
  0x11   : > { %s1133_s29 = scalar_lea.hbm %s1653_s1, 4096 }
  0x12   : > { %p1348_p11 = pnand %p1069_p9, %p1656_p1  ;;  %p1134_p12 = scmp.ne.s32.totalorder %s1653_s1, %s1133_s29 }
  0x13   : > { %p1140_p5 = scmp.lt.u32.totalorder %s1133_s29, %s1653_s1 }
  0x14   : > { %p1135_p13 = pneg %p1348_p11 }
  0x16   : > { %p1136_p0 = pnand %p1135_p13, %p1134_p12 }
  0x18   : > { %p1137_p3 = pneg %p1136_p0 }
  0x1a   : > { %p1142_p7 = pnand %p1140_p5, %p1137_p3 }
  0x1c   : > { %1145 = shalt.err (!%p1142_p7)
}
  0x1d   : > { %s1146_s7 = scalar_lea.vmem %s1341_s22, 4096  ;;  %p1154_p2 = scmp.lt.s32.totalorder %s1341_s22, %s1341_s22 }
  0x1e   : > { %p1147_p9 = scmp.ne.s32.totalorder %s1341_s22, %s1146_s7  ;;  %p1155_p6 = scmp.lt.s32.totalorder %s1146_s7, %s1146_s7 }
  0x20   : > { %p1149_p10 = pnand %p1147_p9, %p1135_p13  ;;  %p1156_p4 = por %p1155_p6, %p1154_p2 }
  0x22   : > { %p1150_p1 = pneg %p1149_p10 }
  0x24   : > { %p1157_p8 = pnand %p1156_p4, %p1150_p1 }
  0x26   : > { %1160 = shalt.err (!%p1157_p8)
}
  0x27   : > { %s1264_s8 = smov 256   ;;  %s1265_s9 = smov 16  }
  0x28   : > { %1072 = dma.hbm_to_vmem [thread:$0]  (!%p1348_p11), %s1653_s1, 4096, %s1341_s22, [#allocation7], %s1264_s8, %s1264_s8, %s1265_s9  }
  0x29   : > { %p25_p2 = scmp.eq.s32.totalorder %s24_s26, 0  ;;  %p34_p1 = scmp.ne.s32.totalorder %s1257_s14, %s1253_s13 }
  0x2a   : > { %p35_p4 = scmp.eq.s32.totalorder %s1261_s15, 0  ;;  %p1082_p6 = scmp.lt.s32.totalorder %s1261_s15, 2 }
  0x2b   : > { %s1384_s17 = scalar_select %p25_p2, %s1257_s14, %s27_s25  }
  0x2c   : > { %p36_p8 = por %p35_p4, %p34_p1  ;;  %p1663_p10 = scmp.eq.s32.totalorder %s1318_s16, 1 }
  0x2d   : > { %s148_s27 = sand.u32 1, %s1257_s14   ;;  %s1013_s28 = sshll.u32 %s1261_s15, 7 }
  0x2e   : > { %p1388_p12 = por %p1663_p10, %p34_p1  ;;  %s1012_s29 = sshll.u32 %s148_s27, 3 }
  0x2f   : > { %s1397_s4 = scalar_lea.hbm %s1652_s0, %s1013_s28  ;;  %s152_s22 = scalar_lea.vmem [#allocation3], %s1012_s29 }
  0x30   : > { %s159_s25 = sshll.u32 %s152_s22, 4  ;;  %p1399_p11 = pnand %p1082_p6, %p36_p8  ;;  %s1403_s25 = int_to_ptr.vmem [resolvable:$true] %s159_s25 }
  0x31   : > { %s149_s5 = scalar_lea.sflag [#allocation4], %s148_s27  ;;  %s1161_s6 = scalar_lea.hbm %s1397_s4, 128 }
  0x32   : > { %p1162_p13 = scmp.ne.s32.totalorder %s1397_s4, %s1161_s6  ;;  %p1163_p0 = pneg %p1399_p11 }
  0x33   : > { %s1166_s9 = scalar_lea.hbm %s1652_s0, 256  ;;  %p1167_p7 = scmp.lt.u32.totalorder %s1397_s4, %s1652_s0 }
  0x34   : > { %p1164_p3 = pnand %p1163_p0, %p1162_p13  ;;  %p1168_p9 = scmp.lt.u32.totalorder %s1166_s9, %s1161_s6 }
  0x35   : > { %p1170_p1 = scmp.lt.u32.totalorder %s1161_s6, %s1397_s4 }
  0x36   : > { %p1165_p5 = pneg %p1164_p3  ;;  %p1169_p2 = por %p1168_p9, %p1167_p7 }
  0x38   : > { %p1171_p4 = por %p1170_p1, %p1169_p2 }
  0x3a   : > { %p1172_p6 = pnand %p1171_p4, %p1165_p5 }
  0x3c   : > { %1175 = shalt.err (!%p1172_p6)
}
  0x3d   : > { %s1176_s27 = scalar_lea.vmem %s1403_s25, 128  ;;  %s1266_s28 = smov [#allocation3]  }
  0x3e   : > { %p1177_p8 = scmp.ne.s32.totalorder %s1403_s25, %s1176_s27  ;;  %s1181_s29 = sshll.u32 %s1266_s28, 4  ;;  %s1182_s29 = int_to_ptr.vmem [resolvable:$false] %s1181_s29 }
  0x3f   : > { %s1183_s23 = scalar_lea.vmem %s1182_s29, 256  ;;  %p1184_p3 = scmp.lt.s32.totalorder %s1403_s25, %s1182_s29 }
  0x40   : > { %p1179_p10 = pnand %p1177_p8, %p1163_p0  ;;  %p1185_p7 = scmp.lt.s32.totalorder %s1183_s23, %s1176_s27 }
  0x42   : > { %p1180_p13 = pneg %p1179_p10  ;;  %p1186_p9 = por %p1185_p7, %p1184_p3 }
  0x44   : > { %p1187_p2 = pnand %p1186_p9, %p1180_p13 }
  0x46   : > { %1190 = shalt.err (!%p1187_p2)
}
  0x47   : > { %1076 = dma.hbm_to_vmem [thread:$0]  (!%p1399_p11), %s1397_s4, 128, %s1403_s25, %s149_s5  }
  0x48   : > { %p1666_p5 = scmp.ne.s32.totalorder %s1661_s20, 0 }
  0x49   : > { %s1433_s30 = sand.u32 (!%p1666_p5), 1, %s1253_s13   ;;  %p1667_p0 = scmp.ne.s32.totalorder (!%p1666_p5), %s1659_s18, 0 }
  0x4a   : > { %168 = sbr.rel (%p1666_p5) target bundleno = 1199 (0x4af), region = 32  ;;  %s1015_s22 = sshll.u32 (!%p1666_p5), %s1433_s30, 3 }
  0x4b   : > { %s171_s6 = scalar_lea.sflag (!%p1666_p5), [#allocation4], %s1433_s30  ;;  %s1439_s7 = scalar_lea.vmem (!%p1666_p5), [#allocation3], %s1015_s22 }
  0x51   : > { %1236 = dma.done.wait (%p1667_p0), %s171_s6, 128  }
  0x52   : > { %1238 = vsyncadd (%p1667_p0), %s171_s6, 4294967168  ;;  %p1668_p11 = scmp.eq.s32.totalorder %s1318_s16, 0 }
  0x54   : > { %1240 = dma.done.wait (%p1668_p11), [#allocation7], 4096   ;;  %p1669_p1 = pmov %p1668_p11 }
  0x55   : > { %v1267_v0 = vmov 0.0   ;;  %v202_v1 = vld [vmem:[#allocation6 + $0x8] sm:$0xff]  ;;  %v204_v2 = vld [vmem:[#allocation6 + $0x18] sm:$0xff]  ;;  %v201_v3 = vld [vmem:[#allocation6] sm:$0xff]  ;;  %vm1268_vm0 = vmmov 0   ;;  %v236_v50 = vlaneseq  ;;  %s1269_s4 = smov 122  }
  0x56   : > { %1242 = vsyncadd (%p1669_p1), [#allocation7], 4294963200  ;;  %310 = vmatprep.mubr.f32.mxu0 %v1267_v0  ;;  %1024 = vmatprep.subr.mxu1 %v1267_v0  ;;  %v1029_v4 = vpack.c.bf16 %v204_v2, %v202_v1  ;;  %v203_v5 = vld [vmem:[#allocation6 + $0x10] sm:$0xff]  ;;  %v206_v6 = vld [vmem:[#allocation6 + $0x28] sm:$0xff]  ;;  %s1270_s25 = smov 126   ;;  %s1271_s26 = smov 124  }
  0x57   : > { %v208_v7 = vld [vmem:[#allocation6 + $0x38] sm:$0xff]  ;;  %v1031_v8 = vpack.c.bf16 %v203_v5, %v201_v3  ;;  %v205_v10 = vld [vmem:[#allocation6 + $0x20] sm:$0xff]  ;;  %v207_v11 = vld [vmem:[#allocation6 + $0x30] sm:$0xff]  ;;  %1026 = vmatprep.mubr.msk.f32.mxu1 %vm1268_vm0, %v1267_v0  ;;  %v1454_v51 = vshrl.u32 %v236_v50, 7  ;;  %v1272_v1 = vmov 0   ;;  %vm470_vm1 = vcmask 11264  }
  0x58   : > { %v1033_v9 = vpack.c.bf16 %v208_v7, %v206_v6  ;;  %v210_v12 = vld [vmem:[#allocation6 + $0x48] sm:$0xff]  ;;  %1030 = vmatprep.subr.bf16.mxu0 %v1029_v4  ;;  %v212_v13 = vld [vmem:[#allocation6 + $0x58] sm:$0xff]  ;;  %v1035_v14 = vpack.c.bf16 %v207_v11, %v205_v10  ;;  %v209_v16 = vld [vmem:[#allocation6 + $0x40] sm:$0xff]  ;;  %1130 = vset.pattern.permute.xlu1 %v1272_v1  ;;  %v1273_v2 = vmov 1983009808   ;;  %vm625_vm2 = vcmask 1041409  }
  0x59   : > { %1032 = vmatpush1.bf16.msra.mxu0 %v1031_v8  ;;  %v1037_v15 = vpack.c.bf16 %v212_v13, %v210_v12  ;;  %v211_v17 = vld [vmem:[#allocation6 + $0x50] sm:$0xff]  ;;  %v214_v18 = vld [vmem:[#allocation6 + $0x68] sm:$0xff]  ;;  %v216_v19 = vld [vmem:[#allocation6 + $0x78] sm:$0xff]  ;;  %v238_v52 = vsub.s32 0, %v1454_v51  ;;  %v242_v54 = vsub.s32 1, %v1454_v51  ;;  %1129 = vset.pattern.permute.xlu0 %v1272_v1  ;;  %v405_v3 = vunpack.c.l.s4 %v1273_v2  ;;  %s1275_s5 = smov 7  }
  0x5a   : > { %1034 = vmatprep.subr.bf16.mxu0 %v1033_v9  ;;  %v1039_v20 = vpack.c.bf16 %v211_v17, %v209_v16  ;;  %v1041_v21 = vpack.c.bf16 %v216_v19, %v214_v18  ;;  %v213_v22 = vld [vmem:[#allocation6 + $0x60] sm:$0xff]  ;;  %v215_v23 = vld [vmem:[#allocation6 + $0x70] sm:$0xff]  ;;  %v218_v24 = vld [vmem:[#allocation6 + $0x88] sm:$0xff]  ;;  %v1274_v4 = vmov 1934713408   ;;  %vm627_vm3 = vcmask 1042434  }
  0x5b   : > { %v220_v25 = vld [vmem:[#allocation6 + $0x98] sm:$0xff]  ;;  %v1043_v26 = vpack.c.bf16 %v215_v23, %v213_v22  ;;  %v217_v28 = vld [vmem:[#allocation6 + $0x80] sm:$0xff]  ;;  %v219_v29 = vld [vmem:[#allocation6 + $0x90] sm:$0xff]  ;;  %v437_v5 = vunpack.c.l.s4 %v1274_v4  ;;  %v406_v6 = vunpack.c.0.s8 %v405_v3  ;;  %vm629_vm4 = vcmask 1043459   ;;  %s1019_s8 = sshll.u32 %s1318_s16, 7  ;;  %s200_s9 = scalar_lea.vmem [#allocation8], %s1015_s22 }
  0x5c   : > { %v1045_v27 = vpack.c.bf16 %v220_v25, %v218_v24  ;;  %v222_v30 = vld [vmem:[#allocation6 + $0xa8] sm:$0xff]  ;;  %v224_v31 = vld [vmem:[#allocation6 + $0xb8] sm:$0xff]  ;;  %v1047_v32 = vpack.c.bf16 %v219_v29, %v217_v28  ;;  %v221_v34 = vld [vmem:[#allocation6 + $0xa0] sm:$0xff]  ;;  %vm631_vm5 = vcmask 1044484   ;;  %vm633_vm6 = vcmask 1045509   ;;  %s928_s10 = sshll.u32 %s200_s9, 4  ;;  %s1608_s28 = scalar_lea.hbm %s1655_s3, %s1019_s8  ;;  %s1610_s10 = int_to_ptr.vmem [resolvable:$true] %s928_s10 }
  0x5d   : > { %1036 = vmatpush1.bf16.msra.mxu0 %v1035_v14  ;;  %v1049_v33 = vpack.c.bf16 %v224_v31, %v222_v30  ;;  %v223_v35 = vld [vmem:[#allocation6 + $0xb0] sm:$0xff]  ;;  %v226_v36 = vld [vmem:[#allocation6 + $0xc8] sm:$0xff]  ;;  %v228_v37 = vld [vmem:[#allocation6 + $0xd8] sm:$0xff]  ;;  %v438_v9 = vunpack.c.0.s8 %v437_v5  ;;  %v1467_v10 = vsub.s32 %v406_v6, %v1454_v51  ;;  %vm635_vm7 = vcmask 1046534   ;;  %s915_s16 = scalar_lea.sflag [#allocation5], %s1433_s30  ;;  %s1191_s29 = scalar_lea.vmem %s1610_s10, 128 }
  0x5e   : > { %1038 = vmatprep.subr.bf16.mxu0 %v1037_v15  ;;  %v1051_v38 = vpack.c.bf16 %v223_v35, %v221_v34  ;;  %v1053_v39 = vpack.c.bf16 %v228_v37, %v226_v36  ;;  %v225_v40 = vld [vmem:[#allocation6 + $0xc0] sm:$0xff]  ;;  %v227_v41 = vld [vmem:[#allocation6 + $0xd0] sm:$0xff]  ;;  %v230_v42 = vld [vmem:[#allocation6 + $0xe8] sm:$0xff]  ;;  %vm637_vm8 = vcmask 1047559   ;;  %vm714_vm9 = vcmask 9216   ;;  %p1192_p4 = scmp.ne.s32.totalorder %s1610_s10, %s1191_s29  ;;  %s1276_s23 = smov [#allocation8]  }
  0x5f   : > { %v232_v43 = vld [vmem:[#allocation6 + $0xf8] sm:$0xff]  ;;  %v1055_v44 = vpack.c.bf16 %v227_v41, %v225_v40  ;;  %v229_v46 = vld [vmem:[#allocation6 + $0xe0] sm:$0xff]  ;;  %v231_v47 = vld [vmem:[#allocation6 + $0xf0] sm:$0xff]  ;;  %v1472_v16 = vsub.s32 %v438_v9, %v1454_v51  ;;  %v1495_v41 = vand.u32 127, %v236_v50  ;;  %vm739_vm10 = vcmask 1041408   ;;  %s1195_s22 = sshll.u32 %s1276_s23, 4  ;;  %s1196_s22 = int_to_ptr.vmem [resolvable:$false] %s1195_s22 }
  0x60   : > { %v1057_v45 = vpack.c.bf16 %v232_v43, %v230_v42  ;;  %v1059_v48 = vpack.c.bf16 %v231_v47, %v229_v46  ;;  %v234_v49 = vld [vmem:[%s1439_s7] sm:$0xff]  ;;  %vm905_vm11 = vcmask 7168   ;;  %vm907_vm12 = vcmask 23552   ;;  %p1193_p6 = pnand %p1192_p4, %p1388_p12  ;;  %s1197_s6 = scalar_lea.vmem %s1196_s22, 256 }
  0x61   : > { %1040 = vmatpush1.bf16.msra.mxu0 %v1039_v20  ;;  %v233_v53 = vld [vmem:[%s1654_s2] sm:$0x3]  ;;  %v861_v42 = vadd.s32 4294967293, %v1495_v41  ;;  %vm909_vm13 = vcmask 56320   ;;  %vm911_vm14 = vcmask 121856   ;;  %p1198_p10 = scmp.lt.s32.totalorder %s1610_s10, %s1196_s22  ;;  %p1199_p13 = scmp.lt.s32.totalorder %s1197_s6, %s1191_s29 }
  0x62   : > { %1042 = vmatprep.subr.bf16.mxu0 %v1041_v21  ;;  %v239_v55 = vrot.slane %v233_v53, %v238_v52  ;;  %v243_v57 = vrot.slane %v233_v53, %v242_v54  ;;  %p1194_p8 = pneg %p1193_p6 }
  0x63   : > { %p1200_p3 = por %p1199_p13, %p1198_p10 }
  0x65   : > { %1044 = vmatpush1.bf16.msra.mxu0 %v1043_v26  ;;  %p1201_p7 = pnand %p1200_p3, %p1194_p8 }
  0x66   : > { %1046 = vmatprep.subr.bf16.mxu0 %v1045_v27 }
  0x69   : > { %1048 = vmatpush1.bf16.msra.mxu0 %v1047_v32 }
  0x6a   : > { %1050 = vmatprep.subr.bf16.mxu0 %v1049_v33 }
  0x6d   : > { %1052 = vmatpush1.bf16.msra.mxu0 %v1051_v38 }
  0x6e   : > { %1054 = vmatprep.subr.bf16.mxu0 %v1053_v39 }
  0x71   : > { %1056 = vmatpush1.bf16.msra.mxu0 %v1055_v44 }
  0x72   : > { %1058 = vmatprep.subr.bf16.mxu0 %v1057_v45  ;;  %v1499_v45 = vsub.s32 %v861_v42, %v1454_v51 }
  0x75   : > { %1060 = vmatpush1.bf16.msra.mxu0 %v1059_v48 }
  0x78   : > { %311 = vmatmul.mubr.f32.vlgmr.msra.gmra.mrb[0].mxu0 %v234_v49 }
 0x14b   : > { %v312_v56 = vpop.f32.mrb[0].mxu0 }
 0x14c   : > { %v313_v58 = vadd.f32 %v312_v56, %v239_v55  ;;  %v314_v59 = vpop.f32.mrb[1].mxu0 }
 0x14d   : > { %v315_v60 = vadd.f32 %v314_v59, %v243_v57 }
 0x14e   : > { %1025 = vmatpush3.xpose.msra.mxu1 %v313_v58 }
 0x151   : > { %1027 = vmatmul.mubr.f32.vlgmr.msra.gmra.mrb[0].mxu1 %v315_v60 }
 0x224   : > { %v387_v61 = vpop.f32.mrb[0].mxu1 }
 0x225   : > { %1131 = vtanh.f32 %v387_v61  ;;  %v1028_v62 = vpop.f32.mrb[1].mxu1 }
 0x22f   : > { %v1461_v63 = vpop.eup %1131 }
 0x230   : > { %399 = vrot.lane.b32.xlu1 %v1461_v63, %s1269_s4  ;;  %393 = vrot.lane.b32.xlu0 %v1461_v63, %s1270_s25 }
 0x234   : > { %396 = vrot.lane.b32.xlu0 %v1461_v63, %s1271_s26 }
 0x2a2   : > { %v400_v7 = vpop.permute.xlu1 %399  ;;  %v394_v8 = vpop.permute.xlu0 %393 }
 0x2a3   : > { %v418_v11 = vcombine.low %v394_v8, %v400_v7  ;;  %v419_v12 = vcombine.high %v394_v8, %v400_v7 }
 0x2a5   : > { %v426_v17 = vrot.slane %v418_v11, %v1467_v10  ;;  %v433_v18 = vrot.slane %v419_v12, %v1467_v10 }
 0x2a6   : > { %v397_v13 = vpop.permute.xlu0 %396 }
 0x2a7   : > { %v402_v14 = vcombine.low %v1461_v63, %v397_v13  ;;  %v403_v15 = vcombine.high %v1461_v63, %v397_v13 }
 0x2a9   : > { %v410_v19 = vrot.slane %v402_v14, %v1467_v10  ;;  %v417_v20 = vrot.slane %v403_v15, %v1467_v10 }
 0x2ab   : > { %v450_v21 = vcombine.low %v417_v20, %v433_v18  ;;  %v435_v22 = vcombine.high %v410_v19, %v426_v17  ;;  %v434_v23 = vcombine.low %v410_v19, %v426_v17  ;;  %v451_v26 = vcombine.high %v417_v20, %v433_v18 }
 0x2ad   : > { %v449_v24 = vrot.slane %v435_v22, %v1472_v16  ;;  %v442_v25 = vrot.slane %v434_v23, %v1472_v16  ;;  %v458_v27 = vrot.slane %v450_v21, %v1472_v16  ;;  %v465_v35 = vrot.slane %v451_v26, %v1472_v16 }
 0x2ae   : > { %v563_v21 = vsub.s32 %v1495_v41, %v1454_v51 }
 0x2af   : > { %v477_v28 = vsel %vm470_vm1, %v449_v24, -inf  ;;  %v471_v29 = vsel %vm470_vm1, %v442_v25, -inf  ;;  %v467_v30 = vcombine.high %v449_v24, %v1267_v0  ;;  %v466_v31 = vcombine.high %v442_v25, %v1267_v0 }
 0x2b0   : > { %478 = vmax.xlane.f32.xlu0 %v477_v28  ;;  %472 = vmax.xlane.f32.xlu1 %v471_v29  ;;  %v468_v34 = vcombine.high %v458_v27, %v1267_v0  ;;  %v483_v37 = vsel %vm470_vm1, %v458_v27, -inf  ;;  %v469_v38 = vcombine.high %v465_v35, %v1267_v0  ;;  %v489_v40 = vsel %vm470_vm1, %v465_v35, -inf }
 0x2b1   : > { %v480_v32 = vsel %vm470_vm1, %v467_v30, -inf  ;;  %v474_v33 = vsel %vm470_vm1, %v466_v31, -inf }
 0x2b2   : > { %v486_v36 = vsel %vm470_vm1, %v468_v34, -inf  ;;  %v492_v39 = vsel %vm470_vm1, %v469_v38, -inf }
 0x2b4   : > { %481 = vmax.xlane.f32.xlu1 %v480_v32  ;;  %475 = vmax.xlane.f32.xlu0 %v474_v33 }
 0x2b8   : > { %487 = vmax.xlane.f32.xlu1 %v486_v36  ;;  %484 = vmax.xlane.f32.xlu0 %v483_v37 }
 0x2bc   : > { %493 = vmax.xlane.f32.xlu1 %v492_v39  ;;  %490 = vmax.xlane.f32.xlu0 %v489_v40 }
 0x33d   : > { %v479_v43 = vpop.xlane.xlu0 %478  ;;  %v473_v44 = vpop.xlane.xlu1 %472 }
 0x33e   : > { %518 = vperm.xlu1 %1130, %v479_v43   ;;  %512 = vperm.xlu0 %1129, %v473_v44   ;;  %v865_v48 = vrot.slane %v473_v44, %v1499_v45  ;;  %v873_v50 = vrot.slane %v479_v43, %v1499_v45  ;;  %v503_v5 = vrot.slane %v473_v44, 2  ;;  %v505_v7 = vrot.slane %v479_v43, 2 }
 0x341   : > { %v482_v46 = vpop.xlane.xlu1 %481  ;;  %v476_v47 = vpop.xlane.xlu0 %475 }
 0x342   : > { %v869_v49 = vrot.slane %v476_v47, %v1499_v45  ;;  %v877_v52 = vrot.slane %v482_v46, %v1499_v45  ;;  %v504_v8 = vrot.slane %v476_v47, 2  ;;  %v506_v9 = vrot.slane %v482_v46, 2 }
 0x344   : > { %v894_v53 = vsel %vm625_vm2, %v869_v49, %v865_v48 }
 0x345   : > { %v895_v54 = vsel %vm627_vm3, %v873_v50, %v894_v53  ;;  %v488_v55 = vpop.xlane.xlu1 %487  ;;  %v485_v56 = vpop.xlane.xlu0 %484 }
 0x346   : > { %v885_v57 = vrot.slane %v488_v55, %v1499_v45  ;;  %v896_v58 = vsel %vm629_vm4, %v877_v52, %v895_v54  ;;  %v507_v59 = vrot.slane %v485_v56, 2  ;;  %524 = vperm.xlu1 %1130, %v485_v56   ;;  %v881_v60 = vrot.slane %v485_v56, %v1499_v45 }
 0x347   : > { %v508_v3 = vrot.slane %v488_v55, 2 }
 0x348   : > { %548 = vperm.xlu0 %1129, %v507_v59   ;;  %v897_v61 = vsel %vm631_vm5, %v881_v60, %v896_v58 }
 0x349   : > { %v1511_v62 = vpop.xlane.xlu0 %490  ;;  %v1514_v1 = vsel %vm633_vm6, %v885_v57, %v897_v61  ;;  %v1518_v4 = vpop.xlane.xlu1 %493 }
 0x34a   : > { %v509_v2 = vrot.slane %v1511_v62, 2  ;;  %530 = vperm.xlu1 %1130, %v1511_v62   ;;  %v510_v6 = vrot.slane %v1518_v4, 2 }
 0x34c   : > { %554 = vperm.xlu0 %1129, %v509_v2  }
 0x34e   : > { %515 = vperm.xlu1 %1130, %v476_v47  }
 0x350   : > { %551 = vperm.xlu0 %1129, %v508_v3  }
 0x352   : > { %536 = vperm.xlu1 %1130, %v503_v5  }
 0x354   : > { %557 = vperm.xlu0 %1129, %v510_v6  }
 0x356   : > { %542 = vperm.xlu1 %1130, %v505_v7  }
 0x35a   : > { %521 = vperm.xlu1 %1130, %v482_v46  }
 0x35e   : > { %527 = vperm.xlu1 %1130, %v488_v55  }
 0x362   : > { %539 = vperm.xlu1 %1130, %v504_v8  }
 0x366   : > { %545 = vperm.xlu1 %1130, %v506_v9  }
 0x36a   : > { %533 = vperm.xlu1 %1130, %v1518_v4  }
 0x3bd   : > { %v519_v11 = vpop.permute.xlu1 %518  ;;  %v513_v15 = vpop.permute.xlu0 %512 }
 0x3be   : > { %v564_v25 = vrot.slane %v513_v15, %v563_v21  ;;  %v572_v28 = vrot.slane %v519_v11, %v563_v21 }
 0x3c5   : > { %v525_v12 = vpop.permute.xlu1 %524 }
 0x3c6   : > { %v580_v37 = vrot.slane %v525_v12, %v563_v21 }
 0x3c7   : > { %v549_v18 = vpop.permute.xlu0 %548 }
 0x3c8   : > { %v612_v42 = vrot.slane %v549_v18, %v563_v21 }
 0x3c9   : > { %v531_v13 = vpop.permute.xlu1 %530 }
 0x3ca   : > { %v588_v50 = vrot.slane %v531_v13, %v563_v21 }
 0x3cb   : > { %v555_v22 = vpop.permute.xlu0 %554 }
 0x3cc   : > { %v620_v52 = vrot.slane %v555_v22, %v563_v21 }
 0x3cd   : > { %v516_v14 = vpop.permute.xlu1 %515 }
 0x3ce   : > { %v568_v23 = vrot.slane %v516_v14, %v563_v21 }
 0x3cf   : > { %v552_v29 = vpop.permute.xlu0 %551 }
 0x3d0   : > { %v626_v26 = vsel %vm625_vm2, %v568_v23, %v564_v25  ;;  %v616_v47 = vrot.slane %v552_v29, %v563_v21 }
 0x3d1   : > { %v537_v17 = vpop.permute.xlu1 %536  ;;  %v628_v33 = vsel %vm627_vm3, %v572_v28, %v626_v26 }
 0x3d2   : > { %v596_v31 = vrot.slane %v537_v17, %v563_v21 }
 0x3d3   : > { %v558_v43 = vpop.permute.xlu0 %557 }
 0x3d4   : > { %v624_v55 = vrot.slane %v558_v43, %v563_v21 }
 0x3d5   : > { %v543_v19 = vpop.permute.xlu1 %542 }
 0x3d6   : > { %v604_v38 = vrot.slane %v543_v19, %v563_v21 }
 0x3d9   : > { %v522_v20 = vpop.permute.xlu1 %521 }
 0x3da   : > { %v576_v27 = vrot.slane %v522_v20, %v563_v21 }
 0x3dc   : > { %v630_v34 = vsel %vm629_vm4, %v576_v27, %v628_v33 }
 0x3dd   : > { %v528_v24 = vpop.permute.xlu1 %527  ;;  %v632_v44 = vsel %vm631_vm5, %v580_v37, %v630_v34 }
 0x3de   : > { %v584_v35 = vrot.slane %v528_v24, %v563_v21 }
 0x3e0   : > { %v634_v48 = vsel %vm633_vm6, %v584_v35, %v632_v44 }
 0x3e1   : > { %v540_v30 = vpop.permute.xlu1 %539  ;;  %v636_v58 = vsel %vm635_vm7, %v588_v50, %v634_v48 }
 0x3e2   : > { %v600_v32 = vrot.slane %v540_v30, %v563_v21 }
 0x3e4   : > { %v639_v36 = vsel %vm625_vm2, %v600_v32, %v596_v31  ;;  %v820_v31 = vadd.s32 4294967295, %v1495_v41 }
 0x3e5   : > { %v546_v39 = vpop.permute.xlu1 %545  ;;  %v640_v46 = vsel %vm627_vm3, %v604_v38, %v639_v36 }
 0x3e6   : > { %v608_v40 = vrot.slane %v546_v39, %v563_v21  ;;  %v1565_v39 = vsub.s32 %v820_v31, %v1454_v51 }
 0x3e8   : > { %v641_v49 = vsel %vm629_vm4, %v608_v40, %v640_v46 }
 0x3e9   : > { %v642_v53 = vsel %vm631_vm5, %v612_v42, %v641_v49  ;;  %v534_v54 = vpop.permute.xlu1 %533 }
 0x3ea   : > { %v643_v56 = vsel %vm633_vm6, %v616_v47, %v642_v53  ;;  %v592_v57 = vrot.slane %v534_v54, %v563_v21 }
 0x3eb   : > { %v644_v59 = vsel %vm635_vm7, %v620_v52, %v643_v56 }
 0x3ec   : > { %v638_v60 = vsel %vm637_vm8, %v592_v57, %v636_v58  ;;  %v645_v61 = vsel %vm637_vm8, %v624_v55, %v644_v59 }
 0x3ed   : > { %v648_v2 = vcombine.high %v638_v60, %v1267_v0  ;;  %v655_v3 = vrot.slane %v638_v60, %v1467_v10  ;;  %v670_v5 = vrot.slane %v645_v61, %v1467_v10  ;;  %v663_v6 = vcombine.high %v645_v61, %v1267_v0 }
 0x3ef   : > { %v679_v7 = vcombine.high %v655_v3, %v670_v5  ;;  %v678_v8 = vcombine.low %v655_v3, %v670_v5  ;;  %v662_v9 = vrot.slane %v648_v2, %v1467_v10  ;;  %v677_v11 = vrot.slane %v663_v6, %v1467_v10 }
 0x3f1   : > { %v693_v12 = vrot.slane %v679_v7, %v1472_v16  ;;  %v686_v13 = vrot.slane %v678_v8, %v1472_v16  ;;  %v694_v14 = vcombine.low %v662_v9, %v677_v11  ;;  %v695_v15 = vcombine.high %v662_v9, %v677_v11 }
 0x3f3   : > { %v721_v17 = vsel %vm714_vm9, %v693_v12, -inf  ;;  %v715_v18 = vsel %vm714_vm9, %v686_v13, -inf  ;;  %v711_v19 = vcombine.high %v693_v12, %v1267_v0  ;;  %v710_v20 = vcombine.high %v686_v13, %v1267_v0 }
 0x3f4   : > { %722 = vmax.xlane.f32.xlu0 %v721_v17  ;;  %716 = vmax.xlane.f32.xlu1 %v715_v18  ;;  %v702_v21 = vrot.slane %v694_v14, %v1472_v16  ;;  %v709_v24 = vrot.slane %v695_v15, %v1472_v16 }
 0x3f5   : > { %v724_v10 = vsel %vm714_vm9, %v711_v19, -inf  ;;  %v718_v22 = vsel %vm714_vm9, %v710_v20, -inf }
 0x3f6   : > { %v712_v23 = vcombine.high %v702_v21, %v1267_v0  ;;  %v727_v25 = vsel %vm714_vm9, %v702_v21, -inf  ;;  %v713_v27 = vcombine.high %v709_v24, %v1267_v0  ;;  %v733_v28 = vsel %vm714_vm9, %v709_v24, -inf }
 0x3f8   : > { %725 = vmax.xlane.f32.xlu1 %v724_v10  ;;  %719 = vmax.xlane.f32.xlu0 %v718_v22  ;;  %v730_v26 = vsel %vm714_vm9, %v712_v23, -inf  ;;  %v736_v29 = vsel %vm714_vm9, %v713_v27, -inf }
 0x3fc   : > { %728 = vmax.xlane.f32.xlu0 %v727_v25  ;;  %731 = vmax.xlane.f32.xlu1 %v730_v26 }
 0x400   : > { %734 = vmax.xlane.f32.xlu0 %v733_v28  ;;  %737 = vmax.xlane.f32.xlu1 %v736_v29 }
 0x416   : > { %902 = vrot.lane.b32.xlu0 %v1461_v63, %s1275_s5 }
 0x481   : > { %v723_v16 = vpop.xlane.xlu0 %722  ;;  %v717_v30 = vpop.xlane.xlu1 %716 }
 0x482   : > { %v754_v32 = vsel %vm739_vm10, %v723_v16, -inf  ;;  %v740_v0 = vsel %vm739_vm10, %v717_v30, -inf  ;;  %v824_v54 = vrot.slane %v717_v30, %v1565_v39  ;;  %v832_v58 = vrot.slane %v723_v16, %v1565_v39 }
 0x483   : > { %v755_v33 = vrot.slane %v754_v32, 4  ;;  %v741_v34 = vrot.slane %v740_v0, 4 }
 0x485   : > { %v756_v35 = vmax.f32 %v754_v32, %v755_v33  ;;  %v742_v36 = vmax.f32 %v740_v0, %v741_v34  ;;  %v726_v37 = vpop.xlane.xlu1 %725  ;;  %v720_v38 = vpop.xlane.xlu0 %719 }
 0x486   : > { %v761_v63 = vsel %vm739_vm10, %v726_v37, -inf  ;;  %v747_v40 = vsel %vm739_vm10, %v720_v38, -inf  ;;  %v828_v46 = vrot.slane %v720_v38, %v1565_v39  ;;  %v836_v5 = vrot.slane %v726_v37, %v1565_v39 }
 0x487   : > { %v757_v42 = vrot.slane %v756_v35, 2  ;;  %v743_v43 = vrot.slane %v742_v36, 2  ;;  %v762_v41 = vrot.slane %v761_v63, 4  ;;  %v748_v44 = vrot.slane %v747_v40, 4 }
 0x488   : > { %v853_v59 = vsel %vm625_vm2, %v828_v46, %v824_v54 }
 0x489   : > { %v744_v47 = vmax.f32 %v742_v36, %v743_v43  ;;  %v763_v48 = vmax.f32 %v761_v63, %v762_v41  ;;  %v749_v49 = vmax.f32 %v747_v40, %v748_v44  ;;  %v729_v50 = vpop.xlane.xlu0 %728  ;;  %v732_v52 = vpop.xlane.xlu1 %731  ;;  %v758_v53 = vmax.f32 %v756_v35, %v757_v42 }
 0x48a   : > { %v768_v51 = vsel %vm739_vm10, %v729_v50, -inf  ;;  %v775_v55 = vsel %vm739_vm10, %v732_v52, -inf  ;;  %v854_v17 = vsel %vm627_vm3, %v832_v58, %v853_v59  ;;  %v840_v20 = vrot.slane %v729_v50, %v1565_v39 }
 0x48b   : > { %v764_v56 = vrot.slane %v763_v48, 2  ;;  %v750_v57 = vrot.slane %v749_v49, 2  ;;  %v769_v60 = vrot.slane %v768_v51, 4  ;;  %v776_v61 = vrot.slane %v775_v55, 4 }
 0x48c   : > { %v745_v2 = vrot.slane %v744_v47, 1  ;;  %v759_v9 = vrot.slane %v758_v53, 1  ;;  %v855_v27 = vsel %vm629_vm4, %v836_v5, %v854_v17  ;;  %v844_v36 = vrot.slane %v732_v52, %v1565_v39 }
 0x48d   : > { %v765_v3 = vmax.f32 %v763_v48, %v764_v56  ;;  %v751_v6 = vmax.f32 %v749_v49, %v750_v57  ;;  %v735_v7 = vpop.xlane.xlu0 %734  ;;  %v738_v8 = vpop.xlane.xlu1 %737  ;;  %v770_v11 = vmax.f32 %v768_v51, %v769_v60  ;;  %v777_v12 = vmax.f32 %v775_v55, %v776_v61 }
 0x48e   : > { %v782_v13 = vsel %vm739_vm10, %v735_v7, -inf  ;;  %v789_v10 = vsel %vm739_vm10, %v738_v8, -inf  ;;  %v746_v22 = vmax.f32 %v744_v47, %v745_v2  ;;  %v760_v26 = vmax.f32 %v758_v53, %v759_v9 }
 0x48f   : > { %v766_v14 = vrot.slane %v765_v3, 1  ;;  %v752_v15 = vrot.slane %v751_v6, 1  ;;  %v783_v18 = vrot.slane %v782_v13, 4  ;;  %v771_v19 = vrot.slane %v770_v11, 2 }
 0x490   : > { %v778_v21 = vrot.slane %v777_v12, 2  ;;  %v790_v25 = vrot.slane %v789_v10, 4  ;;  %v856_v40 = vsel %vm631_vm5, %v840_v20, %v855_v27  ;;  %v848_v43 = vrot.slane %v735_v7, %v1565_v39 }
 0x491   : > { %v753_v23 = vmax.f32 %v751_v6, %v752_v15  ;;  %v784_v24 = vmax.f32 %v782_v13, %v783_v18  ;;  %v772_v28 = vmax.f32 %v770_v11, %v771_v19  ;;  %v767_v16 = vmax.f32 %v765_v3, %v766_v14 }
 0x492   : > { %v779_v29 = vmax.f32 %v777_v12, %v778_v21  ;;  %v791_v32 = vmax.f32 %v789_v10, %v790_v25  ;;  %v889_v41 = vrot.slane %v1511_v62, %v1499_v45  ;;  %v857_v48 = vsel %vm633_vm6, %v844_v36, %v856_v40 }
 0x493   : > { %v804_v30 = vsel %vm625_vm2, %v753_v23, %v746_v22  ;;  %v785_v31 = vrot.slane %v784_v24, 2  ;;  %v773_v33 = vrot.slane %v772_v28, 1  ;;  %v852_v52 = vrot.slane %v738_v8, %v1565_v39 }
 0x494   : > { %v805_v0 = vsel %vm627_vm3, %v760_v26, %v804_v30  ;;  %v780_v34 = vrot.slane %v779_v29, 1  ;;  %v792_v38 = vrot.slane %v791_v32, 2  ;;  %v893_v53 = vrot.slane %v1518_v4, %v1499_v45  ;;  %v903_v4 = vpop.permute.xlu0 %902 }
 0x495   : > { %v806_v35 = vsel %vm629_vm4, %v767_v16, %v805_v0  ;;  %v786_v37 = vmax.f32 %v784_v24, %v785_v31  ;;  %v774_v63 = vmax.f32 %v772_v28, %v773_v33  ;;  %v858_v51 = vsel %vm635_vm7, %v848_v43, %v857_v48 }
 0x496   : > { %v781_v42 = vmax.f32 %v779_v29, %v780_v34  ;;  %v793_v46 = vmax.f32 %v791_v32, %v792_v38  ;;  %v899_v62 = vsel %vm635_vm7, %v889_v41, %v1514_v1  ;;  %v859_v57 = vsel %vm637_vm8, %v852_v52, %v858_v51 }
 0x497   : > { %v787_v44 = vrot.slane %v786_v37, 1  ;;  %v807_v47 = vsel %vm631_vm5, %v774_v63, %v806_v35  ;;  %v900_v45 = vsel %vm637_vm8, %v893_v53, %v899_v62 }
 0x498   : > { %v794_v50 = vrot.slane %v793_v46, 1  ;;  %v808_v54 = vsel %vm633_vm6, %v781_v42, %v807_v47 }
 0x499   : > { %v788_v49 = vmax.f32 %v786_v37, %v787_v44 }
 0x49a   : > { %v795_v55 = vmax.f32 %v793_v46, %v794_v50 }
 0x49b   : > { %v809_v56 = vsel %vm635_vm7, %v788_v49, %v808_v54 }
 0x49c   : > { %v810_v39 = vsel %vm637_vm8, %v795_v55, %v809_v56 }
 0x49d   : > { %v906_v1 = vsel %vm905_vm11, %v810_v39, %v859_v57 }
 0x49e   : > { %v908_v58 = vsel %vm907_vm12, %v906_v1, %v900_v45 }
 0x49f   : > { %v910_v59 = vsel %vm909_vm13, %v908_v58, %v903_v4 }
 0x4a0   : > { %v912_v60 = vsel %vm911_vm14, %v910_v59, 0.0 }
 0x4a1   : > { %913 = vst [vmem:[%s200_s9] sm:$0xff] %v912_v60 }
 0x4a2   : > { %1204 = shalt.err (!%p1201_p7)
}
 0x4a3   : > { %s1205_s30 = scalar_lea.hbm %s1608_s28, 128  ;;  %s1209_s20 = scalar_lea.hbm %s1655_s3, 256 }
 0x4a4   : > { %p1206_p9 = scmp.ne.s32.totalorder %s1608_s28, %s1205_s30  ;;  %p1210_p0 = scmp.lt.u32.totalorder %s1608_s28, %s1655_s3 }
 0x4a5   : > { %p1211_p11 = scmp.lt.u32.totalorder %s1209_s20, %s1205_s30  ;;  %p1213_p4 = scmp.lt.u32.totalorder %s1205_s30, %s1608_s28 }
 0x4a6   : > { %p1207_p2 = pnand %p1206_p9, %p1388_p12 }
 0x4a7   : > { %p1212_p1 = por %p1211_p11, %p1210_p0 }
 0x4a8   : > { %p1208_p5 = pneg %p1207_p2 }
 0x4a9   : > { %p1214_p6 = por %p1213_p4, %p1212_p1 }
 0x4ab   : > { %p1215_p8 = pnand %p1214_p6, %p1208_p5 }
 0x4ad   : > { %1218 = shalt.err (!%p1215_p8)
}
 0x4ae   : > { %1067 = dma.vmem_to_hbm [thread:$0]  (%p1388_p12), %s1610_s10, 128, %s1608_s28, %s915_s16  }
 0x4af PF: > { %s940_s26 = sand.u32 1, %s1249_s12   ;;  %p1670_p10 = scmp.ne.s32.totalorder %s1660_s19, 0 }
 0x4b0   : > { %p1671_p13 = scmp.ge.s32.totalorder %s1261_s15, 2  ;;  %s941_s5 = scalar_lea.sflag [#allocation5], %s940_s26 }
 0x4b2   : > { %p1078_p3 = pnand %p1671_p13, %p1670_p10 }
 0x4b4   : > { %1244 = dma.done.wait (!%p1078_p3), %s941_s5, 128  }
 0x4b5   : > { %1246 = vsyncadd (!%p1078_p3), %s941_s5, 4294967168  ;;  %p17_p7 = scmp.ge.s32.totalorder %s1353_s24, 4   ;;  %s1672_s12 = smov %s1253_s13 }
 0x4b6   : > { %s1673_s13 = smov %s1257_s14  ;;  %s1674_s14 = smov %s1384_s17 }
 0x4b7   : > { %s1675_s15 = smov %s1353_s24  ;;  %19 = sbr.rel (!%p17_p7) target bundleno = 6 (0x6), region = 81 }
 0x4be   :  { %946 = vsyncpa [#allocation4], 1 }
 0x4bf   :  { %948 = vsyncpa [#allocation4 + $0x1], 1 }
 0x4c0   :  { %949 = vsyncpa [#allocation7], 1 }
 0x4c1   :  { %950 = vsyncpa [#allocation5], 1 }
 0x4c2   :  { %952 = vsyncpa [#allocation5 + $0x1], 1 }

// kernel: tpu_custom_call.1
= control target key start
LH: loop header
LB: loop body
LE: loop exit
PB: predicated region body
PF: predicated region fallthrough
CT: control target
= control target key end

     0   :  { %8 = vsyncpa [#allocation4], 0  ;;  %s1652_s0 = inlined_call_operand.hbm [shape: f32[16,128], index: 0, kind: input, shape index: {}]   ;;  %s1653_s1 = inlined_call_operand.hbm [shape: f32[128,256], index: 1, kind: input, shape index: {}]   ;;  %s1654_s2 = inlined_call_operand.vmem [shape: f32[1,256], index: 2, kind: input, shape index: {}]   ;;  %s1655_s3 = inlined_call_operand.hbm [shape: f32[2,8,128], index: 3, kind: output, shape index: {}]  }
   0x1   :  { %10 = vsyncpa [#allocation4 + $0x1], 0 }
   0x2   :  { %11 = vsyncpa [#allocation7], 0 }
   0x3   :  { %12 = vsyncpa [#allocation5], 0 }
   0x4   :  { %14 = vsyncpa [#allocation5 + $0x1], 0  ;;  %s1297_s12 = smov 0   ;;  %s1299_s13 = smov 0  }
   0x5   :  { %s1301_s14 = smov 0   ;;  %s1303_s15 = smov 0  }
   0x6 LB: > { %s1318_s16 = sadd.s32 4294967295, %s1261_s15   ;;  %s1008_s17 = sadd.s32 4294967294, %s1261_s15   ;;  %s1261_s15 = sphi %s1303_s15, %s1675_s15   ;;  %s1257_s14 = sphi %s1301_s14, %s1674_s14   ;;  %s1253_s13 = sphi %s1299_s13, %s1673_s13   ;;  %s1249_s12 = sphi %s1297_s12, %s1672_s12  }
   0x7   : > { %p40_p0 = scmp.ne.s32.totalorder %s1253_s13, %s1249_s12  ;;  %p1656_p1 = scmp.eq.s32.totalorder %s1318_s16, 0 }
   0x8   : > { %p112_p3 = scmp.eq.s32.totalorder %s1008_s17, 1  ;;  %p1009_p5 = scmp.ge.s32.totalorder %s1261_s15, 1 }
   0x9   : > { %p1327_p4 = por %p1656_p1, %p40_p0  ;;  %p119_p7 = scmp.lt.s32.totalorder %s1261_s15, 3 }
   0xa   : > { %p1332_p6 = por %p112_p3, %p40_p0  ;;  %s1263_s21 = smov [#allocation6]  }
   0xb   : > { %s1659_s18 = scalar_select %p1327_p4, 1, 0 }
   0xc   : > { %s1660_s19 = scalar_select %p1332_p6, 1, 0 }
   0xd   : > { %p1337_p8 = pnand %p1009_p5, %p119_p7  ;;  %s131_s22 = sshll.u32 %s1263_s21, 4  ;;  %s1341_s22 = int_to_ptr.vmem [resolvable:$true] %s131_s22 }
   0xe   : > { %s1353_s24 = sadd.s32 1, %s1261_s15   ;;  %s27_s25 = sadd.s32 1, %s1257_s14 }
   0xf   : > { %s1661_s20 = scalar_select %p1337_p8, 1, 0 }
  0x10   : > { %p1069_p9 = pneg %p1337_p8  ;;  %s24_s26 = ssub.s32 %s1261_s15, %s1353_s24 }
  0x11   : > { %s1133_s29 = scalar_lea.hbm %s1653_s1, 4096 }
  0x12   : > { %p1348_p11 = pnand %p1069_p9, %p1656_p1  ;;  %p1134_p12 = scmp.ne.s32.totalorder %s1653_s1, %s1133_s29 }
  0x13   : > { %p1140_p5 = scmp.lt.u32.totalorder %s1133_s29, %s1653_s1 }
  0x14   : > { %p1135_p13 = pneg %p1348_p11 }
  0x16   : > { %p1136_p0 = pnand %p1135_p13, %p1134_p12 }
  0x18   : > { %p1137_p3 = pneg %p1136_p0 }
  0x1a   : > { %p1142_p7 = pnand %p1140_p5, %p1137_p3 }
  0x1c   : > { %1145 = shalt.err (!%p1142_p7)
}
  0x1d   : > { %s1146_s7 = scalar_lea.vmem %s1341_s22, 4096  ;;  %p1154_p2 = scmp.lt.s32.totalorder %s1341_s22, %s1341_s22 }
  0x1e   : > { %p1147_p9 = scmp.ne.s32.totalorder %s1341_s22, %s1146_s7  ;;  %p1155_p6 = scmp.lt.s32.totalorder %s1146_s7, %s1146_s7 }
  0x20   : > { %p1149_p10 = pnand %p1147_p9, %p1135_p13  ;;  %p1156_p4 = por %p1155_p6, %p1154_p2 }
  0x22   : > { %p1150_p1 = pneg %p1149_p10 }
  0x24   : > { %p1157_p8 = pnand %p1156_p4, %p1150_p1 }
  0x26   : > { %1160 = shalt.err (!%p1157_p8)
}
  0x27   : > { %s1264_s8 = smov 256   ;;  %s1265_s9 = smov 16  }
  0x28   : > { %1072 = dma.hbm_to_vmem [thread:$0]  (!%p1348_p11), %s1653_s1, 4096, %s1341_s22, [#allocation7], %s1264_s8, %s1264_s8, %s1265_s9  }
  0x29   : > { %p25_p2 = scmp.eq.s32.totalorder %s24_s26, 0  ;;  %p34_p1 = scmp.ne.s32.totalorder %s1257_s14, %s1253_s13 }
  0x2a   : > { %p35_p4 = scmp.eq.s32.totalorder %s1261_s15, 0  ;;  %p1082_p6 = scmp.lt.s32.totalorder %s1261_s15, 2 }
  0x2b   : > { %s1384_s17 = scalar_select %p25_p2, %s1257_s14, %s27_s25  }
  0x2c   : > { %p36_p8 = por %p35_p4, %p34_p1  ;;  %p1663_p10 = scmp.eq.s32.totalorder %s1318_s16, 1 }
  0x2d   : > { %s148_s27 = sand.u32 1, %s1257_s14   ;;  %s1013_s28 = sshll.u32 %s1261_s15, 7 }
  0x2e   : > { %p1388_p12 = por %p1663_p10, %p34_p1  ;;  %s1012_s29 = sshll.u32 %s148_s27, 3 }
  0x2f   : > { %s1397_s4 = scalar_lea.hbm %s1652_s0, %s1013_s28  ;;  %s152_s22 = scalar_lea.vmem [#allocation3], %s1012_s29 }
  0x30   : > { %s159_s25 = sshll.u32 %s152_s22, 4  ;;  %p1399_p11 = pnand %p1082_p6, %p36_p8  ;;  %s1403_s25 = int_to_ptr.vmem [resolvable:$true] %s159_s25 }
  0x31   : > { %s149_s5 = scalar_lea.sflag [#allocation4], %s148_s27  ;;  %s1161_s6 = scalar_lea.hbm %s1397_s4, 128 }
  0x32   : > { %p1162_p13 = scmp.ne.s32.totalorder %s1397_s4, %s1161_s6  ;;  %p1163_p0 = pneg %p1399_p11 }
  0x33   : > { %s1166_s9 = scalar_lea.hbm %s1652_s0, 256  ;;  %p1167_p7 = scmp.lt.u32.totalorder %s1397_s4, %s1652_s0 }
  0x34   : > { %p1164_p3 = pnand %p1163_p0, %p1162_p13  ;;  %p1168_p9 = scmp.lt.u32.totalorder %s1166_s9, %s1161_s6 }
  0x35   : > { %p1170_p1 = scmp.lt.u32.totalorder %s1161_s6, %s1397_s4 }
  0x36   : > { %p1165_p5 = pneg %p1164_p3  ;;  %p1169_p2 = por %p1168_p9, %p1167_p7 }
  0x38   : > { %p1171_p4 = por %p1170_p1, %p1169_p2 }
  0x3a   : > { %p1172_p6 = pnand %p1171_p4, %p1165_p5 }
  0x3c   : > { %1175 = shalt.err (!%p1172_p6)
}
  0x3d   : > { %s1176_s27 = scalar_lea.vmem %s1403_s25, 128  ;;  %s1266_s28 = smov [#allocation3]  }
  0x3e   : > { %p1177_p8 = scmp.ne.s32.totalorder %s1403_s25, %s1176_s27  ;;  %s1181_s29 = sshll.u32 %s1266_s28, 4  ;;  %s1182_s29 = int_to_ptr.vmem [resolvable:$false] %s1181_s29 }
  0x3f   : > { %s1183_s23 = scalar_lea.vmem %s1182_s29, 256  ;;  %p1184_p3 = scmp.lt.s32.totalorder %s1403_s25, %s1182_s29 }
  0x40   : > { %p1179_p10 = pnand %p1177_p8, %p1163_p0  ;;  %p1185_p7 = scmp.lt.s32.totalorder %s1183_s23, %s1176_s27 }
  0x42   : > { %p1180_p13 = pneg %p1179_p10  ;;  %p1186_p9 = por %p1185_p7, %p1184_p3 }
  0x44   : > { %p1187_p2 = pnand %p1186_p9, %p1180_p13 }
  0x46   : > { %1190 = shalt.err (!%p1187_p2)
}
  0x47   : > { %1076 = dma.hbm_to_vmem [thread:$0]  (!%p1399_p11), %s1397_s4, 128, %s1403_s25, %s149_s5  }
  0x48   : > { %p1666_p5 = scmp.ne.s32.totalorder %s1661_s20, 0 }
  0x49   : > { %s1433_s30 = sand.u32 (!%p1666_p5), 1, %s1253_s13   ;;  %p1667_p0 = scmp.ne.s32.totalorder (!%p1666_p5), %s1659_s18, 0 }
  0x4a   : > { %168 = sbr.rel (%p1666_p5) target bundleno = 1199 (0x4af), region = 32  ;;  %s1015_s22 = sshll.u32 (!%p1666_p5), %s1433_s30, 3 }
  0x4b   : > { %s171_s6 = scalar_lea.sflag (!%p1666_p5), [#allocation4], %s1433_s30  ;;  %s1439_s7 = scalar_lea.vmem (!%p1666_p5), [#allocation3], %s1015_s22 }
  0x51   : > { %1236 = dma.done.wait (%p1667_p0), %s171_s6, 128  }
  0x52   : > { %1238 = vsyncadd (%p1667_p0), %s171_s6, 4294967168  ;;  %p1668_p11 = scmp.eq.s32.totalorder %s1318_s16, 0 }
  0x54   : > { %1240 = dma.done.wait (%p1668_p11), [#allocation7], 4096   ;;  %p1669_p1 = pmov %p1668_p11 }
  0x55   : > { %v1267_v0 = vmov 0.0   ;;  %v202_v1 = vld [vmem:[#allocation6 + $0x8] sm:$0xff]  ;;  %v204_v2 = vld [vmem:[#allocation6 + $0x18] sm:$0xff]  ;;  %v201_v3 = vld [vmem:[#allocation6] sm:$0xff]  ;;  %vm1268_vm0 = vmmov 0   ;;  %v236_v50 = vlaneseq  ;;  %s1269_s4 = smov 122  }
  0x56   : > { %1242 = vsyncadd (%p1669_p1), [#allocation7], 4294963200  ;;  %310 = vmatprep.mubr.f32.mxu0 %v1267_v0  ;;  %1024 = vmatprep.subr.mxu1 %v1267_v0  ;;  %v1029_v4 = vpack.c.bf16 %v204_v2, %v202_v1  ;;  %v203_v5 = vld [vmem:[#allocation6 + $0x10] sm:$0xff]  ;;  %v206_v6 = vld [vmem:[#allocation6 + $0x28] sm:$0xff]  ;;  %s1270_s25 = smov 126   ;;  %s1271_s26 = smov 124  }
  0x57   : > { %v208_v7 = vld [vmem:[#allocation6 + $0x38] sm:$0xff]  ;;  %v1031_v8 = vpack.c.bf16 %v203_v5, %v201_v3  ;;  %v205_v10 = vld [vmem:[#allocation6 + $0x20] sm:$0xff]  ;;  %v207_v11 = vld [vmem:[#allocation6 + $0x30] sm:$0xff]  ;;  %1026 = vmatprep.mubr.msk.f32.mxu1 %vm1268_vm0, %v1267_v0  ;;  %v1454_v51 = vshrl.u32 %v236_v50, 7  ;;  %v1272_v1 = vmov 0   ;;  %vm470_vm1 = vcmask 11264  }
  0x58   : > { %v1033_v9 = vpack.c.bf16 %v208_v7, %v206_v6  ;;  %v210_v12 = vld [vmem:[#allocation6 + $0x48] sm:$0xff]  ;;  %1030 = vmatprep.subr.bf16.mxu0 %v1029_v4  ;;  %v212_v13 = vld [vmem:[#allocation6 + $0x58] sm:$0xff]  ;;  %v1035_v14 = vpack.c.bf16 %v207_v11, %v205_v10  ;;  %v209_v16 = vld [vmem:[#allocation6 + $0x40] sm:$0xff]  ;;  %1130 = vset.pattern.permute.xlu1 %v1272_v1  ;;  %v1273_v2 = vmov 1983009808   ;;  %vm625_vm2 = vcmask 1041409  }
  0x59   : > { %1032 = vmatpush1.bf16.msra.mxu0 %v1031_v8  ;;  %v1037_v15 = vpack.c.bf16 %v212_v13, %v210_v12  ;;  %v211_v17 = vld [vmem:[#allocation6 + $0x50] sm:$0xff]  ;;  %v214_v18 = vld [vmem:[#allocation6 + $0x68] sm:$0xff]  ;;  %v216_v19 = vld [vmem:[#allocation6 + $0x78] sm:$0xff]  ;;  %v238_v52 = vsub.s32 0, %v1454_v51  ;;  %v242_v54 = vsub.s32 1, %v1454_v51  ;;  %1129 = vset.pattern.permute.xlu0 %v1272_v1  ;;  %v405_v3 = vunpack.c.l.s4 %v1273_v2  ;;  %s1275_s5 = smov 7  }
  0x5a   : > { %1034 = vmatprep.subr.bf16.mxu0 %v1033_v9  ;;  %v1039_v20 = vpack.c.bf16 %v211_v17, %v209_v16  ;;  %v1041_v21 = vpack.c.bf16 %v216_v19, %v214_v18  ;;  %v213_v22 = vld [vmem:[#allocation6 + $0x60] sm:$0xff]  ;;  %v215_v23 = vld [vmem:[#allocation6 + $0x70] sm:$0xff]  ;;  %v218_v24 = vld [vmem:[#allocation6 + $0x88] sm:$0xff]  ;;  %v1274_v4 = vmov 1934713408   ;;  %vm627_vm3 = vcmask 1042434  }
  0x5b   : > { %v220_v25 = vld [vmem:[#allocation6 + $0x98] sm:$0xff]  ;;  %v1043_v26 = vpack.c.bf16 %v215_v23, %v213_v22  ;;  %v217_v28 = vld [vmem:[#allocation6 + $0x80] sm:$0xff]  ;;  %v219_v29 = vld [vmem:[#allocation6 + $0x90] sm:$0xff]  ;;  %v437_v5 = vunpack.c.l.s4 %v1274_v4  ;;  %v406_v6 = vunpack.c.0.s8 %v405_v3  ;;  %vm629_vm4 = vcmask 1043459   ;;  %s1019_s8 = sshll.u32 %s1318_s16, 7  ;;  %s200_s9 = scalar_lea.vmem [#allocation8], %s1015_s22 }
  0x5c   : > { %v1045_v27 = vpack.c.bf16 %v220_v25, %v218_v24  ;;  %v222_v30 = vld [vmem:[#allocation6 + $0xa8] sm:$0xff]  ;;  %v224_v31 = vld [vmem:[#allocation6 + $0xb8] sm:$0xff]  ;;  %v1047_v32 = vpack.c.bf16 %v219_v29, %v217_v28  ;;  %v221_v34 = vld [vmem:[#allocation6 + $0xa0] sm:$0xff]  ;;  %vm631_vm5 = vcmask 1044484   ;;  %vm633_vm6 = vcmask 1045509   ;;  %s928_s10 = sshll.u32 %s200_s9, 4  ;;  %s1608_s28 = scalar_lea.hbm %s1655_s3, %s1019_s8  ;;  %s1610_s10 = int_to_ptr.vmem [resolvable:$true] %s928_s10 }
  0x5d   : > { %1036 = vmatpush1.bf16.msra.mxu0 %v1035_v14  ;;  %v1049_v33 = vpack.c.bf16 %v224_v31, %v222_v30  ;;  %v223_v35 = vld [vmem:[#allocation6 + $0xb0] sm:$0xff]  ;;  %v226_v36 = vld [vmem:[#allocation6 + $0xc8] sm:$0xff]  ;;  %v228_v37 = vld [vmem:[#allocation6 + $0xd8] sm:$0xff]  ;;  %v438_v9 = vunpack.c.0.s8 %v437_v5  ;;  %v1467_v10 = vsub.s32 %v406_v6, %v1454_v51  ;;  %vm635_vm7 = vcmask 1046534   ;;  %s915_s16 = scalar_lea.sflag [#allocation5], %s1433_s30  ;;  %s1191_s29 = scalar_lea.vmem %s1610_s10, 128 }
  0x5e   : > { %1038 = vmatprep.subr.bf16.mxu0 %v1037_v15  ;;  %v1051_v38 = vpack.c.bf16 %v223_v35, %v221_v34  ;;  %v1053_v39 = vpack.c.bf16 %v228_v37, %v226_v36  ;;  %v225_v40 = vld [vmem:[#allocation6 + $0xc0] sm:$0xff]  ;;  %v227_v41 = vld [vmem:[#allocation6 + $0xd0] sm:$0xff]  ;;  %v230_v42 = vld [vmem:[#allocation6 + $0xe8] sm:$0xff]  ;;  %vm637_vm8 = vcmask 1047559   ;;  %vm714_vm9 = vcmask 9216   ;;  %p1192_p4 = scmp.ne.s32.totalorder %s1610_s10, %s1191_s29  ;;  %s1276_s23 = smov [#allocation8]  }
  0x5f   : > { %v232_v43 = vld [vmem:[#allocation6 + $0xf8] sm:$0xff]  ;;  %v1055_v44 = vpack.c.bf16 %v227_v41, %v225_v40  ;;  %v229_v46 = vld [vmem:[#allocation6 + $0xe0] sm:$0xff]  ;;  %v231_v47 = vld [vmem:[#allocation6 + $0xf0] sm:$0xff]  ;;  %v1472_v16 = vsub.s32 %v438_v9, %v1454_v51  ;;  %v1495_v41 = vand.u32 127, %v236_v50  ;;  %vm739_vm10 = vcmask 1041408   ;;  %s1195_s22 = sshll.u32 %s1276_s23, 4  ;;  %s1196_s22 = int_to_ptr.vmem [resolvable:$false] %s1195_s22 }
  0x60   : > { %v1057_v45 = vpack.c.bf16 %v232_v43, %v230_v42  ;;  %v1059_v48 = vpack.c.bf16 %v231_v47, %v229_v46  ;;  %v234_v49 = vld [vmem:[%s1439_s7] sm:$0xff]  ;;  %vm905_vm11 = vcmask 7168   ;;  %vm907_vm12 = vcmask 23552   ;;  %p1193_p6 = pnand %p1192_p4, %p1388_p12  ;;  %s1197_s6 = scalar_lea.vmem %s1196_s22, 256 }
  0x61   : > { %1040 = vmatpush1.bf16.msra.mxu0 %v1039_v20  ;;  %v233_v53 = vld [vmem:[%s1654_s2] sm:$0x3]  ;;  %v861_v42 = vadd.s32 4294967293, %v1495_v41  ;;  %vm909_vm13 = vcmask 56320   ;;  %vm911_vm14 = vcmask 121856   ;;  %p1198_p10 = scmp.lt.s32.totalorder %s1610_s10, %s1196_s22  ;;  %p1199_p13 = scmp.lt.s32.totalorder %s1197_s6, %s1191_s29 }
  0x62   : > { %1042 = vmatprep.subr.bf16.mxu0 %v1041_v21  ;;  %v239_v55 = vrot.slane %v233_v53, %v238_v52  ;;  %v243_v57 = vrot.slane %v233_v53, %v242_v54  ;;  %p1194_p8 = pneg %p1193_p6 }
  0x63   : > { %p1200_p3 = por %p1199_p13, %p1198_p10 }
  0x65   : > { %1044 = vmatpush1.bf16.msra.mxu0 %v1043_v26  ;;  %p1201_p7 = pnand %p1200_p3, %p1194_p8 }
  0x66   : > { %1046 = vmatprep.subr.bf16.mxu0 %v1045_v27 }
  0x69   : > { %1048 = vmatpush1.bf16.msra.mxu0 %v1047_v32 }
  0x6a   : > { %1050 = vmatprep.subr.bf16.mxu0 %v1049_v33 }
  0x6d   : > { %1052 = vmatpush1.bf16.msra.mxu0 %v1051_v38 }
  0x6e   : > { %1054 = vmatprep.subr.bf16.mxu0 %v1053_v39 }
  0x71   : > { %1056 = vmatpush1.bf16.msra.mxu0 %v1055_v44 }
  0x72   : > { %1058 = vmatprep.subr.bf16.mxu0 %v1057_v45  ;;  %v1499_v45 = vsub.s32 %v861_v42, %v1454_v51 }
  0x75   : > { %1060 = vmatpush1.bf16.msra.mxu0 %v1059_v48 }
  0x78   : > { %311 = vmatmul.mubr.f32.vlgmr.msra.gmra.mrb[0].mxu0 %v234_v49 }
 0x14b   : > { %v312_v56 = vpop.f32.mrb[0].mxu0 }
 0x14c   : > { %v313_v58 = vadd.f32 %v312_v56, %v239_v55  ;;  %v314_v59 = vpop.f32.mrb[1].mxu0 }
 0x14d   : > { %v315_v60 = vadd.f32 %v314_v59, %v243_v57 }
 0x14e   : > { %1025 = vmatpush3.xpose.msra.mxu1 %v313_v58 }
 0x151   : > { %1027 = vmatmul.mubr.f32.vlgmr.msra.gmra.mrb[0].mxu1 %v315_v60 }
 0x224   : > { %v387_v61 = vpop.f32.mrb[0].mxu1 }
 0x225   : > { %1131 = vtanh.f32 %v387_v61  ;;  %v1028_v62 = vpop.f32.mrb[1].mxu1 }
 0x22f   : > { %v1461_v63 = vpop.eup %1131 }
 0x230   : > { %399 = vrot.lane.b32.xlu1 %v1461_v63, %s1269_s4  ;;  %393 = vrot.lane.b32.xlu0 %v1461_v63, %s1270_s25 }
 0x234   : > { %396 = vrot.lane.b32.xlu0 %v1461_v63, %s1271_s26 }
 0x2a2   : > { %v400_v7 = vpop.permute.xlu1 %399  ;;  %v394_v8 = vpop.permute.xlu0 %393 }
 0x2a3   : > { %v418_v11 = vcombine.low %v394_v8, %v400_v7  ;;  %v419_v12 = vcombine.high %v394_v8, %v400_v7 }
 0x2a5   : > { %v426_v17 = vrot.slane %v418_v11, %v1467_v10  ;;  %v433_v18 = vrot.slane %v419_v12, %v1467_v10 }
 0x2a6   : > { %v397_v13 = vpop.permute.xlu0 %396 }
 0x2a7   : > { %v402_v14 = vcombine.low %v1461_v63, %v397_v13  ;;  %v403_v15 = vcombine.high %v1461_v63, %v397_v13 }
 0x2a9   : > { %v410_v19 = vrot.slane %v402_v14, %v1467_v10  ;;  %v417_v20 = vrot.slane %v403_v15, %v1467_v10 }
 0x2ab   : > { %v450_v21 = vcombine.low %v417_v20, %v433_v18  ;;  %v435_v22 = vcombine.high %v410_v19, %v426_v17  ;;  %v434_v23 = vcombine.low %v410_v19, %v426_v17  ;;  %v451_v26 = vcombine.high %v417_v20, %v433_v18 }
 0x2ad   : > { %v449_v24 = vrot.slane %v435_v22, %v1472_v16  ;;  %v442_v25 = vrot.slane %v434_v23, %v1472_v16  ;;  %v458_v27 = vrot.slane %v450_v21, %v1472_v16  ;;  %v465_v35 = vrot.slane %v451_v26, %v1472_v16 }
 0x2ae   : > { %v563_v21 = vsub.s32 %v1495_v41, %v1454_v51 }
 0x2af   : > { %v477_v28 = vsel %vm470_vm1, %v449_v24, -inf  ;;  %v471_v29 = vsel %vm470_vm1, %v442_v25, -inf  ;;  %v467_v30 = vcombine.high %v449_v24, %v1267_v0  ;;  %v466_v31 = vcombine.high %v442_v25, %v1267_v0 }
 0x2b0   : > { %478 = vmax.xlane.f32.xlu0 %v477_v28  ;;  %472 = vmax.xlane.f32.xlu1 %v471_v29  ;;  %v468_v34 = vcombine.high %v458_v27, %v1267_v0  ;;  %v483_v37 = vsel %vm470_vm1, %v458_v27, -inf  ;;  %v469_v38 = vcombine.high %v465_v35, %v1267_v0  ;;  %v489_v40 = vsel %vm470_vm1, %v465_v35, -inf }
 0x2b1   : > { %v480_v32 = vsel %vm470_vm1, %v467_v30, -inf  ;;  %v474_v33 = vsel %vm470_vm1, %v466_v31, -inf }
 0x2b2   : > { %v486_v36 = vsel %vm470_vm1, %v468_v34, -inf  ;;  %v492_v39 = vsel %vm470_vm1, %v469_v38, -inf }
 0x2b4   : > { %481 = vmax.xlane.f32.xlu1 %v480_v32  ;;  %475 = vmax.xlane.f32.xlu0 %v474_v33 }
 0x2b8   : > { %487 = vmax.xlane.f32.xlu1 %v486_v36  ;;  %484 = vmax.xlane.f32.xlu0 %v483_v37 }
 0x2bc   : > { %493 = vmax.xlane.f32.xlu1 %v492_v39  ;;  %490 = vmax.xlane.f32.xlu0 %v489_v40 }
 0x33d   : > { %v479_v43 = vpop.xlane.xlu0 %478  ;;  %v473_v44 = vpop.xlane.xlu1 %472 }
 0x33e   : > { %518 = vperm.xlu1 %1130, %v479_v43   ;;  %512 = vperm.xlu0 %1129, %v473_v44   ;;  %v865_v48 = vrot.slane %v473_v44, %v1499_v45  ;;  %v873_v50 = vrot.slane %v479_v43, %v1499_v45  ;;  %v503_v5 = vrot.slane %v473_v44, 2  ;;  %v505_v7 = vrot.slane %v479_v43, 2 }
 0x341   : > { %v482_v46 = vpop.xlane.xlu1 %481  ;;  %v476_v47 = vpop.xlane.xlu0 %475 }
 0x342   : > { %v869_v49 = vrot.slane %v476_v47, %v1499_v45  ;;  %v877_v52 = vrot.slane %v482_v46, %v1499_v45  ;;  %v504_v8 = vrot.slane %v476_v47, 2  ;;  %v506_v9 = vrot.slane %v482_v46, 2 }
 0x344   : > { %v894_v53 = vsel %vm625_vm2, %v869_v49, %v865_v48 }
 0x345   : > { %v895_v54 = vsel %vm627_vm3, %v873_v50, %v894_v53  ;;  %v488_v55 = vpop.xlane.xlu1 %487  ;;  %v485_v56 = vpop.xlane.xlu0 %484 }
 0x346   : > { %v885_v57 = vrot.slane %v488_v55, %v1499_v45  ;;  %v896_v58 = vsel %vm629_vm4, %v877_v52, %v895_v54  ;;  %v507_v59 = vrot.slane %v485_v56, 2  ;;  %524 = vperm.xlu1 %1130, %v485_v56   ;;  %v881_v60 = vrot.slane %v485_v56, %v1499_v45 }
 0x347   : > { %v508_v3 = vrot.slane %v488_v55, 2 }
 0x348   : > { %548 = vperm.xlu0 %1129, %v507_v59   ;;  %v897_v61 = vsel %vm631_vm5, %v881_v60, %v896_v58 }
 0x349   : > { %v1511_v62 = vpop.xlane.xlu0 %490  ;;  %v1514_v1 = vsel %vm633_vm6, %v885_v57, %v897_v61  ;;  %v1518_v4 = vpop.xlane.xlu1 %493 }
 0x34a   : > { %v509_v2 = vrot.slane %v1511_v62, 2  ;;  %530 = vperm.xlu1 %1130, %v1511_v62   ;;  %v510_v6 = vrot.slane %v1518_v4, 2 }
 0x34c   : > { %554 = vperm.xlu0 %1129, %v509_v2  }
 0x34e   : > { %515 = vperm.xlu1 %1130, %v476_v47  }
 0x350   : > { %551 = vperm.xlu0 %1129, %v508_v3  }
 0x352   : > { %536 = vperm.xlu1 %1130, %v503_v5  }
 0x354   : > { %557 = vperm.xlu0 %1129, %v510_v6  }
 0x356   : > { %542 = vperm.xlu1 %1130, %v505_v7  }
 0x35a   : > { %521 = vperm.xlu1 %1130, %v482_v46  }
 0x35e   : > { %527 = vperm.xlu1 %1130, %v488_v55  }
 0x362   : > { %539 = vperm.xlu1 %1130, %v504_v8  }
 0x366   : > { %545 = vperm.xlu1 %1130, %v506_v9  }
 0x36a   : > { %533 = vperm.xlu1 %1130, %v1518_v4  }
 0x3bd   : > { %v519_v11 = vpop.permute.xlu1 %518  ;;  %v513_v15 = vpop.permute.xlu0 %512 }
 0x3be   : > { %v564_v25 = vrot.slane %v513_v15, %v563_v21  ;;  %v572_v28 = vrot.slane %v519_v11, %v563_v21 }
 0x3c5   : > { %v525_v12 = vpop.permute.xlu1 %524 }
 0x3c6   : > { %v580_v37 = vrot.slane %v525_v12, %v563_v21 }
 0x3c7   : > { %v549_v18 = vpop.permute.xlu0 %548 }
 0x3c8   : > { %v612_v42 = vrot.slane %v549_v18, %v563_v21 }
 0x3c9   : > { %v531_v13 = vpop.permute.xlu1 %530 }
 0x3ca   : > { %v588_v50 = vrot.slane %v531_v13, %v563_v21 }
 0x3cb   : > { %v555_v22 = vpop.permute.xlu0 %554 }
 0x3cc   : > { %v620_v52 = vrot.slane %v555_v22, %v563_v21 }
 0x3cd   : > { %v516_v14 = vpop.permute.xlu1 %515 }
 0x3ce   : > { %v568_v23 = vrot.slane %v516_v14, %v563_v21 }
 0x3cf   : > { %v552_v29 = vpop.permute.xlu0 %551 }
 0x3d0   : > { %v626_v26 = vsel %vm625_vm2, %v568_v23, %v564_v25  ;;  %v616_v47 = vrot.slane %v552_v29, %v563_v21 }
 0x3d1   : > { %v537_v17 = vpop.permute.xlu1 %536  ;;  %v628_v33 = vsel %vm627_vm3, %v572_v28, %v626_v26 }
 0x3d2   : > { %v596_v31 = vrot.slane %v537_v17, %v563_v21 }
 0x3d3   : > { %v558_v43 = vpop.permute.xlu0 %557 }
 0x3d4   : > { %v624_v55 = vrot.slane %v558_v43, %v563_v21 }
 0x3d5   : > { %v543_v19 = vpop.permute.xlu1 %542 }
 0x3d6   : > { %v604_v38 = vrot.slane %v543_v19, %v563_v21 }
 0x3d9   : > { %v522_v20 = vpop.permute.xlu1 %521 }
 0x3da   : > { %v576_v27 = vrot.slane %v522_v20, %v563_v21 }
 0x3dc   : > { %v630_v34 = vsel %vm629_vm4, %v576_v27, %v628_v33 }
 0x3dd   : > { %v528_v24 = vpop.permute.xlu1 %527  ;;  %v632_v44 = vsel %vm631_vm5, %v580_v37, %v630_v34 }
 0x3de   : > { %v584_v35 = vrot.slane %v528_v24, %v563_v21 }
 0x3e0   : > { %v634_v48 = vsel %vm633_vm6, %v584_v35, %v632_v44 }
 0x3e1   : > { %v540_v30 = vpop.permute.xlu1 %539  ;;  %v636_v58 = vsel %vm635_vm7, %v588_v50, %v634_v48 }
 0x3e2   : > { %v600_v32 = vrot.slane %v540_v30, %v563_v21 }
 0x3e4   : > { %v639_v36 = vsel %vm625_vm2, %v600_v32, %v596_v31  ;;  %v820_v31 = vadd.s32 4294967295, %v1495_v41 }
 0x3e5   : > { %v546_v39 = vpop.permute.xlu1 %545  ;;  %v640_v46 = vsel %vm627_vm3, %v604_v38, %v639_v36 }
 0x3e6   : > { %v608_v40 = vrot.slane %v546_v39, %v563_v21  ;;  %v1565_v39 = vsub.s32 %v820_v31, %v1454_v51 }
 0x3e8   : > { %v641_v49 = vsel %vm629_vm4, %v608_v40, %v640_v46 }
 0x3e9   : > { %v642_v53 = vsel %vm631_vm5, %v612_v42, %v641_v49  ;;  %v534_v54 = vpop.permute.xlu1 %533 }
 0x3ea   : > { %v643_v56 = vsel %vm633_vm6, %v616_v47, %v642_v53  ;;  %v592_v57 = vrot.slane %v534_v54, %v563_v21 }
 0x3eb   : > { %v644_v59 = vsel %vm635_vm7, %v620_v52, %v643_v56 }
 0x3ec   : > { %v638_v60 = vsel %vm637_vm8, %v592_v57, %v636_v58  ;;  %v645_v61 = vsel %vm637_vm8, %v624_v55, %v644_v59 }
 0x3ed   : > { %v648_v2 = vcombine.high %v638_v60, %v1267_v0  ;;  %v655_v3 = vrot.slane %v638_v60, %v1467_v10  ;;  %v670_v5 = vrot.slane %v645_v61, %v1467_v10  ;;  %v663_v6 = vcombine.high %v645_v61, %v1267_v0 }
 0x3ef   : > { %v679_v7 = vcombine.high %v655_v3, %v670_v5  ;;  %v678_v8 = vcombine.low %v655_v3, %v670_v5  ;;  %v662_v9 = vrot.slane %v648_v2, %v1467_v10  ;;  %v677_v11 = vrot.slane %v663_v6, %v1467_v10 }
 0x3f1   : > { %v693_v12 = vrot.slane %v679_v7, %v1472_v16  ;;  %v686_v13 = vrot.slane %v678_v8, %v1472_v16  ;;  %v694_v14 = vcombine.low %v662_v9, %v677_v11  ;;  %v695_v15 = vcombine.high %v662_v9, %v677_v11 }
 0x3f3   : > { %v721_v17 = vsel %vm714_vm9, %v693_v12, -inf  ;;  %v715_v18 = vsel %vm714_vm9, %v686_v13, -inf  ;;  %v711_v19 = vcombine.high %v693_v12, %v1267_v0  ;;  %v710_v20 = vcombine.high %v686_v13, %v1267_v0 }
 0x3f4   : > { %722 = vmax.xlane.f32.xlu0 %v721_v17  ;;  %716 = vmax.xlane.f32.xlu1 %v715_v18  ;;  %v702_v21 = vrot.slane %v694_v14, %v1472_v16  ;;  %v709_v24 = vrot.slane %v695_v15, %v1472_v16 }
 0x3f5   : > { %v724_v10 = vsel %vm714_vm9, %v711_v19, -inf  ;;  %v718_v22 = vsel %vm714_vm9, %v710_v20, -inf }
 0x3f6   : > { %v712_v23 = vcombine.high %v702_v21, %v1267_v0  ;;  %v727_v25 = vsel %vm714_vm9, %v702_v21, -inf  ;;  %v713_v27 = vcombine.high %v709_v24, %v1267_v0  ;;  %v733_v28 = vsel %vm714_vm9, %v709_v24, -inf }
 0x3f8   : > { %725 = vmax.xlane.f32.xlu1 %v724_v10  ;;  %719 = vmax.xlane.f32.xlu0 %v718_v22  ;;  %v730_v26 = vsel %vm714_vm9, %v712_v23, -inf  ;;  %v736_v29 = vsel %vm714_vm9, %v713_v27, -inf }
 0x3fc   : > { %728 = vmax.xlane.f32.xlu0 %v727_v25  ;;  %731 = vmax.xlane.f32.xlu1 %v730_v26 }
 0x400   : > { %734 = vmax.xlane.f32.xlu0 %v733_v28  ;;  %737 = vmax.xlane.f32.xlu1 %v736_v29 }
 0x416   : > { %902 = vrot.lane.b32.xlu0 %v1461_v63, %s1275_s5 }
 0x481   : > { %v723_v16 = vpop.xlane.xlu0 %722  ;;  %v717_v30 = vpop.xlane.xlu1 %716 }
 0x482   : > { %v754_v32 = vsel %vm739_vm10, %v723_v16, -inf  ;;  %v740_v0 = vsel %vm739_vm10, %v717_v30, -inf  ;;  %v824_v54 = vrot.slane %v717_v30, %v1565_v39  ;;  %v832_v58 = vrot.slane %v723_v16, %v1565_v39 }
 0x483   : > { %v755_v33 = vrot.slane %v754_v32, 4  ;;  %v741_v34 = vrot.slane %v740_v0, 4 }
 0x485   : > { %v756_v35 = vmax.f32 %v754_v32, %v755_v33  ;;  %v742_v36 = vmax.f32 %v740_v0, %v741_v34  ;;  %v726_v37 = vpop.xlane.xlu1 %725  ;;  %v720_v38 = vpop.xlane.xlu0 %719 }
 0x486   : > { %v761_v63 = vsel %vm739_vm10, %v726_v37, -inf  ;;  %v747_v40 = vsel %vm739_vm10, %v720_v38, -inf  ;;  %v828_v46 = vrot.slane %v720_v38, %v1565_v39  ;;  %v836_v5 = vrot.slane %v726_v37, %v1565_v39 }
 0x487   : > { %v757_v42 = vrot.slane %v756_v35, 2  ;;  %v743_v43 = vrot.slane %v742_v36, 2  ;;  %v762_v41 = vrot.slane %v761_v63, 4  ;;  %v748_v44 = vrot.slane %v747_v40, 4 }
 0x488   : > { %v853_v59 = vsel %vm625_vm2, %v828_v46, %v824_v54 }
 0x489   : > { %v744_v47 = vmax.f32 %v742_v36, %v743_v43  ;;  %v763_v48 = vmax.f32 %v761_v63, %v762_v41  ;;  %v749_v49 = vmax.f32 %v747_v40, %v748_v44  ;;  %v729_v50 = vpop.xlane.xlu0 %728  ;;  %v732_v52 = vpop.xlane.xlu1 %731  ;;  %v758_v53 = vmax.f32 %v756_v35, %v757_v42 }
 0x48a   : > { %v768_v51 = vsel %vm739_vm10, %v729_v50, -inf  ;;  %v775_v55 = vsel %vm739_vm10, %v732_v52, -inf  ;;  %v854_v17 = vsel %vm627_vm3, %v832_v58, %v853_v59  ;;  %v840_v20 = vrot.slane %v729_v50, %v1565_v39 }
 0x48b   : > { %v764_v56 = vrot.slane %v763_v48, 2  ;;  %v750_v57 = vrot.slane %v749_v49, 2  ;;  %v769_v60 = vrot.slane %v768_v51, 4  ;;  %v776_v61 = vrot.slane %v775_v55, 4 }
 0x48c   : > { %v745_v2 = vrot.slane %v744_v47, 1  ;;  %v759_v9 = vrot.slane %v758_v53, 1  ;;  %v855_v27 = vsel %vm629_vm4, %v836_v5, %v854_v17  ;;  %v844_v36 = vrot.slane %v732_v52, %v1565_v39 }
 0x48d   : > { %v765_v3 = vmax.f32 %v763_v48, %v764_v56  ;;  %v751_v6 = vmax.f32 %v749_v49, %v750_v57  ;;  %v735_v7 = vpop.xlane.xlu0 %734  ;;  %v738_v8 = vpop.xlane.xlu1 %737  ;;  %v770_v11 = vmax.f32 %v768_v51, %v769_v60  ;;  %v777_v12 = vmax.f32 %v775_v55, %v776_v61 }
 0x48e   : > { %v782_v13 = vsel %vm739_vm10, %v735_v7, -inf  ;;  %v789_v10 = vsel %vm739_vm10, %v738_v8, -inf  ;;  %v746_v22 = vmax.f32 %v744_v47, %v745_v2  ;;  %v760_v26 = vmax.f32 %v758_v53, %v759_v9 }
 0x48f   : > { %v766_v14 = vrot.slane %v765_v3, 1  ;;  %v752_v15 = vrot.slane %v751_v6, 1  ;;  %v783_v18 = vrot.slane %v782_v13, 4  ;;  %v771_v19 = vrot.slane %v770_v11, 2 }
 0x490   : > { %v778_v21 = vrot.slane %v777_v12, 2  ;;  %v790_v25 = vrot.slane %v789_v10, 4  ;;  %v856_v40 = vsel %vm631_vm5, %v840_v20, %v855_v27  ;;  %v848_v43 = vrot.slane %v735_v7, %v1565_v39 }
 0x491   : > { %v753_v23 = vmax.f32 %v751_v6, %v752_v15  ;;  %v784_v24 = vmax.f32 %v782_v13, %v783_v18  ;;  %v772_v28 = vmax.f32 %v770_v11, %v771_v19  ;;  %v767_v16 = vmax.f32 %v765_v3, %v766_v14 }
 0x492   : > { %v779_v29 = vmax.f32 %v777_v12, %v778_v21  ;;  %v791_v32 = vmax.f32 %v789_v10, %v790_v25  ;;  %v889_v41 = vrot.slane %v1511_v62, %v1499_v45  ;;  %v857_v48 = vsel %vm633_vm6, %v844_v36, %v856_v40 }
 0x493   : > { %v804_v30 = vsel %vm625_vm2, %v753_v23, %v746_v22  ;;  %v785_v31 = vrot.slane %v784_v24, 2  ;;  %v773_v33 = vrot.slane %v772_v28, 1  ;;  %v852_v52 = vrot.slane %v738_v8, %v1565_v39 }
 0x494   : > { %v805_v0 = vsel %vm627_vm3, %v760_v26, %v804_v30  ;;  %v780_v34 = vrot.slane %v779_v29, 1  ;;  %v792_v38 = vrot.slane %v791_v32, 2  ;;  %v893_v53 = vrot.slane %v1518_v4, %v1499_v45  ;;  %v903_v4 = vpop.permute.xlu0 %902 }
 0x495   : > { %v806_v35 = vsel %vm629_vm4, %v767_v16, %v805_v0  ;;  %v786_v37 = vmax.f32 %v784_v24, %v785_v31  ;;  %v774_v63 = vmax.f32 %v772_v28, %v773_v33  ;;  %v858_v51 = vsel %vm635_vm7, %v848_v43, %v857_v48 }
 0x496   : > { %v781_v42 = vmax.f32 %v779_v29, %v780_v34  ;;  %v793_v46 = vmax.f32 %v791_v32, %v792_v38  ;;  %v899_v62 = vsel %vm635_vm7, %v889_v41, %v1514_v1  ;;  %v859_v57 = vsel %vm637_vm8, %v852_v52, %v858_v51 }
 0x497   : > { %v787_v44 = vrot.slane %v786_v37, 1  ;;  %v807_v47 = vsel %vm631_vm5, %v774_v63, %v806_v35  ;;  %v900_v45 = vsel %vm637_vm8, %v893_v53, %v899_v62 }
 0x498   : > { %v794_v50 = vrot.slane %v793_v46, 1  ;;  %v808_v54 = vsel %vm633_vm6, %v781_v42, %v807_v47 }
 0x499   : > { %v788_v49 = vmax.f32 %v786_v37, %v787_v44 }
 0x49a   : > { %v795_v55 = vmax.f32 %v793_v46, %v794_v50 }
 0x49b   : > { %v809_v56 = vsel %vm635_vm7, %v788_v49, %v808_v54 }
 0x49c   : > { %v810_v39 = vsel %vm637_vm8, %v795_v55, %v809_v56 }
 0x49d   : > { %v906_v1 = vsel %vm905_vm11, %v810_v39, %v859_v57 }
 0x49e   : > { %v908_v58 = vsel %vm907_vm12, %v906_v1, %v900_v45 }
 0x49f   : > { %v910_v59 = vsel %vm909_vm13, %v908_v58, %v903_v4 }
 0x4a0   : > { %v912_v60 = vsel %vm911_vm14, %v910_v59, 0.0 }
 0x4a1   : > { %913 = vst [vmem:[%s200_s9] sm:$0xff] %v912_v60 }
 0x4a2   : > { %1204 = shalt.err (!%p1201_p7)
}
 0x4a3   : > { %s1205_s30 = scalar_lea.hbm %s1608_s28, 128  ;;  %s1209_s20 = scalar_lea.hbm %s1655_s3, 256 }
 0x4a4   : > { %p1206_p9 = scmp.ne.s32.totalorder %s1608_s28, %s1205_s30  ;;  %p1210_p0 = scmp.lt.u32.totalorder %s1608_s28, %s1655_s3 }
 0x4a5   : > { %p1211_p11 = scmp.lt.u32.totalorder %s1209_s20, %s1205_s30  ;;  %p1213_p4 = scmp.lt.u32.totalorder %s1205_s30, %s1608_s28 }
 0x4a6   : > { %p1207_p2 = pnand %p1206_p9, %p1388_p12 }
 0x4a7   : > { %p1212_p1 = por %p1211_p11, %p1210_p0 }
 0x4a8   : > { %p1208_p5 = pneg %p1207_p2 }
 0x4a9   : > { %p1214_p6 = por %p1213_p4, %p1212_p1 }
 0x4ab   : > { %p1215_p8 = pnand %p1214_p6, %p1208_p5 }
 0x4ad   : > { %1218 = shalt.err (!%p1215_p8)
}
 0x4ae   : > { %1067 = dma.vmem_to_hbm [thread:$0]  (%p1388_p12), %s1610_s10, 128, %s1608_s28, %s915_s16  }
 0x4af PF: > { %s940_s26 = sand.u32 1, %s1249_s12   ;;  %p1670_p10 = scmp.ne.s32.totalorder %s1660_s19, 0 }
 0x4b0   : > { %p1671_p13 = scmp.ge.s32.totalorder %s1261_s15, 2  ;;  %s941_s5 = scalar_lea.sflag [#allocation5], %s940_s26 }
 0x4b2   : > { %p1078_p3 = pnand %p1671_p13, %p1670_p10 }
 0x4b4   : > { %1244 = dma.done.wait (!%p1078_p3), %s941_s5, 128  }
 0x4b5   : > { %1246 = vsyncadd (!%p1078_p3), %s941_s5, 4294967168  ;;  %p17_p7 = scmp.ge.s32.totalorder %s1353_s24, 4   ;;  %s1672_s12 = smov %s1253_s13 }
 0x4b6   : > { %s1673_s13 = smov %s1257_s14  ;;  %s1674_s14 = smov %s1384_s17 }
 0x4b7   : > { %s1675_s15 = smov %s1353_s24  ;;  %19 = sbr.rel (!%p17_p7) target bundleno = 6 (0x6), region = 81 }
 0x4be   :  { %946 = vsyncpa [#allocation4], 1 }
 0x4bf   :  { %948 = vsyncpa [#allocation4 + $0x1], 1 }
 0x4c0   :  { %949 = vsyncpa [#allocation7], 1 }
 0x4c1   :  { %950 = vsyncpa [#allocation5], 1 }
 0x4c2   :  { %952 = vsyncpa [#allocation5 + $0x1], 1 }

</bundles_post_ra>
